<compile_context>
chip_gen: v7x
topology: tpu7x:2x2x1
jax: 0.10.0
libtpu: 0.0.40
codegen_flags: <defaults>
</compile_context>

<pallas_src>
import jax
import jax.numpy as jnp
from jax.experimental import pallas as pl
from jax.experimental.pallas import tpu as pltpu

LANE = 128


def _round_up(x, m):
    return (x + m - 1) // m * m


def _pick_tile_rows(n, h, w, target_rows=512, min_steps=8):
    """Row-tile height TH (a divisor of H).

    Prefer the largest TH with TH*W <= target_rows flattened rows per tile
    (amortizes the ~0.35us per-grid-step overhead), but keep at least
    `min_steps` grid steps so the BlockSpec pipeline has work to overlap and
    both v7x TensorCores get shards of the 'parallel' grid.
    """
    divisors = [d for d in range(1, h + 1) if h % d == 0]
    fits = [d for d in divisors if d * w <= target_rows] or [1]
    with_steps = [d for d in fits if n * (h // d) >= min_steps]
    return max(with_steps) if with_steps else max(fits)


# ------------------------------ Pallas kernel ------------------------------

def _residual_block_kernel(p_main_ref, p_top_ref, p_bot_ref,
                           wcat_ref, bcat_ref, w2_ref,
                           o_ref, y1_buf):
    # Per grid step (one batch image n, one row tile t of TH image rows):
    #   p_main_ref : (1, TH, W, K1) bf16  im2col(x) patches for this row tile
    #   p_top_ref  : (1, 1,  W, K1) bf16  patches of the image row just above
    #   p_bot_ref  : (1, 1,  W, K1) bf16  patches of the image row just below
    #   wcat_ref   : (K1, 2*Cp)     bf16  [w1 | w_proj], BN scale folded in
    #   bcat_ref   : (1, 2*Cp)      f32   [b1 | b_proj + b2]
    #   w2_ref     : (9, Cp, Cp)    bf16  conv2 taps, BN scale folded in
    #   o_ref      : (1, TH, W, Cp)
    #   y1_buf     : (TH+2, W+2, Cp) bf16 VMEM scratch (zero-padded y1 tile)
    t = pl.program_id(1)
    n_tiles = pl.num_programs(1)
    _, TH, W, K1 = p_main_ref.shape
    Cp = o_ref.shape[-1]

    # ---- stage 1: conv1(+BN,ReLU) and projection conv(+BN) share one LHS pass
    p_main = p_main_ref[...].reshape(TH * W, K1)
    acc1 = jnp.dot(p_main, wcat_ref[...], preferred_element_type=jnp.float32)
    acc1 = acc1 + bcat_ref[...]
    y1_main = jnp.maximum(acc1[:, :Cp], 0.0)          # (TH*W, Cp) f32
    yp = acc1[:, Cp:]                                 # projection + conv2 bias, stays in VMEM

    # 1-row halo of y1 above / below the tile, recomputed per tile (cheap).
    w1 = wcat_ref[:, :Cp]
    b1 = bcat_ref[:, :Cp]
    y1_top = jnp.maximum(
        jnp.dot(p_top_ref[...].reshape(W, K1), w1,
                preferred_element_type=jnp.float32) + b1, 0.0)
    y1_bot = jnp.maximum(
        jnp.dot(p_bot_ref[...].reshape(W, K1), w1,
                preferred_element_type=jnp.float32) + b1, 0.0)
    # conv2 zero-pads y1 at the image boundary (halo indices were clamped).
    y1_top = jnp.where(t == 0, jnp.zeros_like(y1_top), y1_top)
    y1_bot = jnp.where(t == n_tiles - 1, jnp.zeros_like(y1_bot), y1_bot)

    # ---- assemble the zero-padded (TH+2, W+2, Cp) y1 tile in VMEM scratch
    zeros_col = jnp.zeros((TH + 2, 1, Cp), dtype=y1_buf.dtype)
    y1_buf[:, 0:1, :] = zeros_col
    y1_buf[:, W + 1:W + 2, :] = zeros_col
    y1_buf[0:1, 1:W + 1, :] = y1_top.reshape(1, W, Cp).astype(y1_buf.dtype)
    y1_buf[TH + 1:TH + 2, 1:W + 1, :] = y1_bot.reshape(1, W, Cp).astype(y1_buf.dtype)
    y1_buf[1:TH + 1, 1:W + 1, :] = y1_main.reshape(TH, W, Cp).astype(y1_buf.dtype)

    # ---- stage 2: conv2(+BN) as 9 in-kernel tap matmuls over the VMEM tile,
    #      residual add of the projection path, final ReLU.
    acc2 = yp
    for tap in range(9):
        dh, dw = divmod(tap, 3)
        lhs = y1_buf[dh:dh + TH, dw:dw + W, :].reshape(TH * W, Cp)
        acc2 = acc2 + jnp.dot(lhs, w2_ref[tap],
                              preferred_element_type=jnp.float32)
    o_ref[...] = jnp.maximum(acc2, 0.0).reshape(1, TH, W, Cp).astype(o_ref.dtype)


# ---------------------------- pallas_call wrapper ----------------------------

def _fused_residual_block(p1, wcat, bcat, w2t, *, tile_h, out_dtype):
    N, H, W, K1 = p1.shape
    Cp = wcat.shape[1] // 2
    T = H // tile_h

    def top_map(n, t):   # image row just above the tile, clamped at the border
        return (n, jnp.maximum(t * tile_h - 1, 0), 0, 0)

    def bot_map(n, t):   # image row just below the tile, clamped at the border
        return (n, jnp.minimum((t + 1) * tile_h, H - 1), 0, 0)

    return pl.pallas_call(
        _residual_block_kernel,
        out_shape=jax.ShapeDtypeStruct((N, H, W, Cp), out_dtype),
        grid=(N, T),
        in_specs=[
            pl.BlockSpec((1, tile_h, W, K1), lambda n, t: (n, t, 0, 0)),
            pl.BlockSpec((1, 1, W, K1), top_map),
            pl.BlockSpec((1, 1, W, K1), bot_map),
            pl.BlockSpec((K1, 2 * Cp), lambda n, t: (0, 0)),
            pl.BlockSpec((1, 2 * Cp), lambda n, t: (0, 0)),
            pl.BlockSpec((9, Cp, Cp), lambda n, t: (0, 0, 0)),
        ],
        out_specs=pl.BlockSpec((1, tile_h, W, Cp), lambda n, t: (n, t, 0, 0)),
        scratch_shapes=[pltpu.VMEM((tile_h + 2, W + 2, Cp), jnp.bfloat16)],
        compiler_params=pltpu.CompilerParams(
            dimension_semantics=("parallel", "parallel"),
            vmem_limit_bytes=32 * 1024 * 1024),
    )(p1, p1, p1, wcat, bcat, w2t)


# --------------------------------- JAX glue ----------------------------------

def _fold_conv_bn(w, cb, bn, eps=1e-5):
    # Fold eval-mode BN (and the conv bias) into weight columns + a bias row.
    gamma, beta, mean, var = bn
    s = gamma / jnp.sqrt(var + eps)             # (Cout,)
    w_f = (w * s).reshape(-1, w.shape[-1])      # (9*Cin, Cout)
    b_f = beta + (cb - mean) * s                # (Cout,)
    return w_f, b_f


def inconv_forward(x_nchw, params, *, out_dtype=jnp.float32):
    """Pallas implementation of InConv.forward (NCHW in, NCHW out)."""
    N, Cin, H, W = x_nchw.shape
    Cout = params["w1"].shape[-1]
    Cp = _round_up(Cout, LANE)
    K1 = 9 * Cin
    tile_h = _pick_tile_rows(N, H, W)

    # --- fold BN (+ conv bias) into weights / bias rows, once at prep time ---
    w1m, b1 = _fold_conv_bn(params["w1"], params["cb1"], params["bn1"])
    wpm, bp = _fold_conv_bn(params["wp"], params["cbp"], params["bnp"])
    w2m, b2 = _fold_conv_bn(params["w2"], params["cb2"], params["bn2"])

    pad_c = (0, Cp - Cout)
    wcat = jnp.concatenate(
        [jnp.pad(w1m, ((0, 0), pad_c)), jnp.pad(wpm, ((0, 0), pad_c))],
        axis=1).astype(jnp.bfloat16)                                # (K1, 2*Cp)
    # conv2's bias rides along with the projection bias (both add into acc2).
    bcat = jnp.concatenate(
        [jnp.pad(b1, pad_c), jnp.pad(bp + b2, pad_c)])[None, :]     # (1, 2*Cp) f32
    w2t = jnp.pad(w2m.reshape(9, Cout, Cout),
                  ((0, 0), pad_c, pad_c)).astype(jnp.bfloat16)      # (9, Cp, Cp)

    # --- stage-1 patches (im2col of x); cast to bf16 BEFORE the concat glue ---
    x = jnp.transpose(x_nchw, (0, 2, 3, 1)).astype(jnp.bfloat16)    # NHWC bf16
    xp = jnp.pad(x, ((0, 0), (1, 1), (1, 1), (0, 0)))
    taps = [xp[:, dh:dh + H, dw:dw + W, :]
            for dh in range(3) for dw in range(3)]
    p1 = jnp.concatenate(taps, axis=-1)                             # (N,H,W,9*Cin)

    out = _fused_residual_block(p1, wcat, bcat, w2t,
                                tile_h=tile_h, out_dtype=out_dtype)
    out = out[:, :, :, :Cout]                                       # drop lane pad
    return jnp.transpose(out, (0, 3, 1, 2))                         # NCHW


def make_params(key, in_ch, out_ch):
    keys = jax.random.split(key, 18)
    ki = iter(keys)

    def bn(c):
        gamma = 1.0 + 0.1 * jax.random.normal(next(ki), (c,), jnp.float32)
        beta = 0.1 * jax.random.normal(next(ki), (c,), jnp.float32)
        mean = 0.05 * jax.random.normal(next(ki), (c,), jnp.float32)
        var = 1.0 + 0.1 * jnp.abs(jax.random.normal(next(ki), (c,), jnp.float32))
        return (gamma, beta, mean, var)

    def conv(cin, cout):
        w = 0.1 * jax.random.normal(next(ki), (3, 3, cin, cout), jnp.float32)
        cb = 0.05 * jax.random.normal(next(ki), (cout,), jnp.float32)
        return w, cb

    w1, cb1 = conv(in_ch, out_ch)
    w2, cb2 = conv(out_ch, out_ch)
    wp, cbp = conv(in_ch, out_ch)
    return dict(w1=w1, cb1=cb1, bn1=bn(out_ch),
                w2=w2, cb2=cb2, bn2=bn(out_ch),
                wp=wp, cbp=cbp, bnp=bn(out_ch))


def inconv_reference(x_nchw, params, eps=1e-5):
    """Pure-JAX f32 reference with torch eval-mode BN semantics."""
    x = jnp.transpose(x_nchw, (0, 2, 3, 1))

    def conv_bn(z, w, cb, bn):
        gamma, beta, mean, var = bn
        y = jax.lax.conv_general_dilated(
            z, w, (1, 1), "SAME",
            dimension_numbers=("NHWC", "HWIO", "NHWC")) + cb
        return (y - mean) / jnp.sqrt(var + eps) * gamma + beta

    y1 = jax.nn.relu(conv_bn(x, params["w1"], params["cb1"], params["bn1"]))
    y2 = conv_bn(y1, params["w2"], params["cb2"], params["bn2"])
    yp = conv_bn(x, params["wp"], params["cbp"], params["bnp"])
    return jnp.transpose(jax.nn.relu(y2 + yp), (0, 3, 1, 2))


if __name__ == "__main__":
    key = jax.random.PRNGKey(0)
    k_x, k_p = jax.random.split(key)

    N, in_ch, out_ch, H, W = 2, 4, 8, 16, 16
    x = jax.random.normal(k_x, (N, in_ch, H, W), jnp.float32)
    params = make_params(k_p, in_ch, out_ch)

    out = jax.block_until_ready(inconv_forward(x, params))
    ref = jax.block_until_ready(inconv_reference(x, params))

    assert out.shape == (N, out_ch, H, W), out.shape
    assert bool(jnp.all(jnp.isfinite(out)))
    max_err = float(jnp.max(jnp.abs(out.astype(jnp.float32) - ref)))
    # bf16 matmul operands vs f32 reference -> loose-ish tolerance
    assert max_err < 5e-2, f"mismatch vs reference: max abs err {max_err}"

    print("KERNEL_OK")
</pallas_src>

<mosaic_0001>
module attributes {stable_mosaic.version = 11 : i64} {
  func.func @_residual_block_kernel(%arg0: i32, %arg1: i32, %arg2: memref<1x4x16x36xbf16, #tpu.memory_space<vmem>>, %arg3: memref<1x1x16x36xbf16, #tpu.memory_space<vmem>>, %arg4: memref<1x1x16x36xbf16, #tpu.memory_space<vmem>>, %arg5: memref<36x256xbf16, #tpu.memory_space<vmem>>, %arg6: memref<1x256xf32, #tpu.memory_space<vmem>>, %arg7: memref<9x128x128xbf16, #tpu.memory_space<vmem>>, %arg8: memref<1x4x16x128xf32, #tpu.memory_space<vmem>>, %arg9: memref<6x18x128xbf16, #tpu.memory_space<vmem>>) attributes {dimension_semantics = [#tpu.dimension_semantics<parallel>, #tpu.dimension_semantics<parallel>], iteration_bounds = array<i64: 2, 4>, scalar_prefetch = 0 : i64, scratch_operands = 1 : i64, tpu.core_type = #tpu.core_type<tc>, window_params = [{transform_indices = @transform_0, window_bounds = array<i64: 1, 4, 16, 36>}, {transform_indices = @transform_1, window_bounds = array<i64: 1, 1, 16, 36>}, {transform_indices = @transform_2, window_bounds = array<i64: 1, 1, 16, 36>}, {pipeline_mode = #tpu.pipeline_mode<synchronous>, transform_indices = @transform_3, window_bounds = array<i64: 36, 256>}, {pipeline_mode = #tpu.pipeline_mode<synchronous>, transform_indices = @transform_4, window_bounds = array<i64: 1, 256>}, {pipeline_mode = #tpu.pipeline_mode<synchronous>, transform_indices = @transform_5, window_bounds = array<i64: 9, 128, 128>}, {transform_indices = @transform_6, window_bounds = array<i64: 1, 4, 16, 128>}]} {
    %c0 = arith.constant 0 : index
    %c0_0 = arith.constant 0 : index
    %c0_1 = arith.constant 0 : index
    %c0_2 = arith.constant 0 : index
    %0 = vector.load %arg2[%c0, %c0_0, %c0_1, %c0_2] : memref<1x4x16x36xbf16, #tpu.memory_space<vmem>>, vector<1x4x16x36xbf16>
    %1 = vector.shape_cast %0 : vector<1x4x16x36xbf16> to vector<64x36xbf16>
    %c0_3 = arith.constant 0 : index
    %c0_4 = arith.constant 0 : index
    %2 = vector.load %arg5[%c0_3, %c0_4] : memref<36x256xbf16, #tpu.memory_space<vmem>>, vector<36x256xbf16>
    %cst = arith.constant dense<0.000000e+00> : vector<64x256xf32>
    %3 = tpu.matmul %1, %2, %cst {dimension_numbers = #tpu.dot_dimension_numbers<[1], [0], [0], [1], [0, 0, 1, 1], [], []>} : vector<64x36xbf16>, vector<36x256xbf16>, vector<64x256xf32> -> vector<64x256xf32>
    %c0_5 = arith.constant 0 : index
    %c0_6 = arith.constant 0 : index
    %4 = vector.load %arg6[%c0_5, %c0_6] : memref<1x256xf32, #tpu.memory_space<vmem>>, vector<1x256xf32>
    %5 = vector.broadcast %4 : vector<1x256xf32> to vector<64x256xf32>
    %6 = arith.addf %3, %5 : vector<64x256xf32>
    %7 = vector.extract_strided_slice %6 {offsets = [0, 0], sizes = [64, 128], strides = [1, 1]} : vector<64x256xf32> to vector<64x128xf32>
    %cst_7 = arith.constant 0.000000e+00 : f32
    %8 = vector.broadcast %cst_7 : f32 to vector<64x128xf32>
    %9 = arith.maximumf %7, %8 : vector<64x128xf32>
    %10 = vector.extract_strided_slice %6 {offsets = [0, 128], sizes = [64, 128], strides = [1, 1]} : vector<64x256xf32> to vector<64x128xf32>
    %c0_8 = arith.constant 0 : index
    %c0_9 = arith.constant 0 : index
    %11 = vector.load %arg5[%c0_8, %c0_9] : memref<36x256xbf16, #tpu.memory_space<vmem>>, vector<36x128xbf16>
    %c0_10 = arith.constant 0 : index
    %c0_11 = arith.constant 0 : index
    %12 = vector.load %arg6[%c0_10, %c0_11] : memref<1x256xf32, #tpu.memory_space<vmem>>, vector<1x128xf32>
    %c0_12 = arith.constant 0 : index
    %c0_13 = arith.constant 0 : index
    %c0_14 = arith.constant 0 : index
    %c0_15 = arith.constant 0 : index
    %13 = vector.load %arg3[%c0_12, %c0_13, %c0_14, %c0_15] : memref<1x1x16x36xbf16, #tpu.memory_space<vmem>>, vector<1x1x16x36xbf16>
    %14 = vector.shape_cast %13 : vector<1x1x16x36xbf16> to vector<16x36xbf16>
    %cst_16 = arith.constant dense<0.000000e+00> : vector<16x128xf32>
    %15 = tpu.matmul %14, %11, %cst_16 {dimension_numbers = #tpu.dot_dimension_numbers<[1], [0], [0], [1], [0, 0, 1, 1], [], []>} : vector<16x36xbf16>, vector<36x128xbf16>, vector<16x128xf32> -> vector<16x128xf32>
    %16 = vector.broadcast %12 : vector<1x128xf32> to vector<16x128xf32>
    %17 = arith.addf %15, %16 : vector<16x128xf32>
    %cst_17 = arith.constant 0.000000e+00 : f32
    %18 = vector.broadcast %cst_17 : f32 to vector<16x128xf32>
    %19 = arith.maximumf %17, %18 : vector<16x128xf32>
    %c0_18 = arith.constant 0 : index
    %c0_19 = arith.constant 0 : index
    %c0_20 = arith.constant 0 : index
    %c0_21 = arith.constant 0 : index
    %20 = vector.load %arg4[%c0_18, %c0_19, %c0_20, %c0_21] : memref<1x1x16x36xbf16, #tpu.memory_space<vmem>>, vector<1x1x16x36xbf16>
    %21 = vector.shape_cast %20 : vector<1x1x16x36xbf16> to vector<16x36xbf16>
    %cst_22 = arith.constant dense<0.000000e+00> : vector<16x128xf32>
    %22 = tpu.matmul %21, %11, %cst_22 {dimension_numbers = #tpu.dot_dimension_numbers<[1], [0], [0], [1], [0, 0, 1, 1], [], []>} : vector<16x36xbf16>, vector<36x128xbf16>, vector<16x128xf32> -> vector<16x128xf32>
    %23 = vector.broadcast %12 : vector<1x128xf32> to vector<16x128xf32>
    %24 = arith.addf %22, %23 : vector<16x128xf32>
    %cst_23 = arith.constant 0.000000e+00 : f32
    %25 = vector.broadcast %cst_23 : f32 to vector<16x128xf32>
    %26 = arith.maximumf %24, %25 : vector<16x128xf32>
    %c0_i32 = arith.constant 0 : i32
    %27 = arith.cmpi eq, %arg1, %c0_i32 : i32
    %cst_24 = arith.constant 0.000000e+00 : f32
    %28 = vector.broadcast %cst_24 : f32 to vector<16x128xf32>
    %29 = arith.select %27, %28, %19 : vector<16x128xf32>
    %c3_i32 = arith.constant 3 : i32
    %30 = arith.cmpi eq, %arg1, %c3_i32 : i32
    %cst_25 = arith.constant 0.000000e+00 : f32
    %31 = vector.broadcast %cst_25 : f32 to vector<16x128xf32>
    %32 = arith.select %30, %31, %26 : vector<16x128xf32>
    %cst_26 = arith.constant 0.000000e+00 : bf16
    %33 = vector.broadcast %cst_26 : bf16 to vector<6x1x128xbf16>
    %c0_27 = arith.constant 0 : index
    %c0_28 = arith.constant 0 : index
    %c0_29 = arith.constant 0 : index
    %34 = vector.load %arg9[%c0_27, %c0_28, %c0_29] : memref<6x18x128xbf16, #tpu.memory_space<vmem>>, vector<6x1x128xbf16>
    tpu.vector_store %arg9[%c0_27, %c0_28, %c0_29], %33 {strides = array<i32>} : memref<6x18x128xbf16, #tpu.memory_space<vmem>>, vector<6x1x128xbf16>,
    %c0_30 = arith.constant 0 : index
    %c17 = arith.constant 17 : index
    %c0_31 = arith.constant 0 : index
    %35 = vector.load %arg9[%c0_30, %c17, %c0_31] : memref<6x18x128xbf16, #tpu.memory_space<vmem>>, vector<6x1x128xbf16>
    tpu.vector_store %arg9[%c0_30, %c17, %c0_31], %33 {strides = array<i32>} : memref<6x18x128xbf16, #tpu.memory_space<vmem>>, vector<6x1x128xbf16>,
    %36 = vector.shape_cast %29 : vector<16x128xf32> to vector<1x16x128xf32>
    %37 = arith.truncf %36 : vector<1x16x128xf32> to vector<1x16x128xbf16>
    %c0_32 = arith.constant 0 : index
    %c1 = arith.constant 1 : index
    %c0_33 = arith.constant 0 : index
    %38 = vector.load %arg9[%c0_32, %c1, %c0_33] : memref<6x18x128xbf16, #tpu.memory_space<vmem>>, vector<1x16x128xbf16>
    tpu.vector_store %arg9[%c0_32, %c1, %c0_33], %37 {strides = array<i32>} : memref<6x18x128xbf16, #tpu.memory_space<vmem>>, vector<1x16x128xbf16>,
    %39 = vector.shape_cast %32 : vector<16x128xf32> to vector<1x16x128xf32>
    %40 = arith.truncf %39 : vector<1x16x128xf32> to vector<1x16x128xbf16>
    %c5 = arith.constant 5 : index
    %c1_34 = arith.constant 1 : index
    %c0_35 = arith.constant 0 : index
    %41 = vector.load %arg9[%c5, %c1_34, %c0_35] : memref<6x18x128xbf16, #tpu.memory_space<vmem>>, vector<1x16x128xbf16>
    tpu.vector_store %arg9[%c5, %c1_34, %c0_35], %40 {strides = array<i32>} : memref<6x18x128xbf16, #tpu.memory_space<vmem>>, vector<1x16x128xbf16>,
    %42 = vector.shape_cast %9 : vector<64x128xf32> to vector<4x16x128xf32>
    %43 = arith.truncf %42 : vector<4x16x128xf32> to vector<4x16x128xbf16>
    %c1_36 = arith.constant 1 : index
    %c1_37 = arith.constant 1 : index
    %c0_38 = arith.constant 0 : index
    %44 = vector.load %arg9[%c1_36, %c1_37, %c0_38] : memref<6x18x128xbf16, #tpu.memory_space<vmem>>, vector<4x16x128xbf16>
    tpu.vector_store %arg9[%c1_36, %c1_37, %c0_38], %43 {strides = array<i32>} : memref<6x18x128xbf16, #tpu.memory_space<vmem>>, vector<4x16x128xbf16>,
    %c0_39 = arith.constant 0 : index
    %c0_40 = arith.constant 0 : index
    %c0_41 = arith.constant 0 : index
    %45 = vector.load %arg9[%c0_39, %c0_40, %c0_41] : memref<6x18x128xbf16, #tpu.memory_space<vmem>>, vector<4x16x128xbf16>
    %46 = vector.shape_cast %45 : vector<4x16x128xbf16> to vector<64x128xbf16>
    %c0_42 = arith.constant 0 : index
    %c0_43 = arith.constant 0 : index
    %c0_44 = arith.constant 0 : index
    %47 = vector.load %arg7[%c0_42, %c0_43, %c0_44] : memref<9x128x128xbf16, #tpu.memory_space<vmem>>, vector<1x128x128xbf16>
    %48 = vector.shape_cast %47 : vector<1x128x128xbf16> to vector<128x128xbf16>
    %cst_45 = arith.constant dense<0.000000e+00> : vector<64x128xf32>
    %49 = tpu.matmul %46, %48, %cst_45 {dimension_numbers = #tpu.dot_dimension_numbers<[1], [0], [0], [1], [0, 0, 1, 1], [], []>} : vector<64x128xbf16>, vector<128x128xbf16>, vector<64x128xf32> -> vector<64x128xf32>
    %50 = arith.addf %10, %49 : vector<64x128xf32>
    %c0_46 = arith.constant 0 : index
    %c1_47 = arith.constant 1 : index
    %c0_48 = arith.constant 0 : index
    %51 = vector.load %arg9[%c0_46, %c1_47, %c0_48] : memref<6x18x128xbf16, #tpu.memory_space<vmem>>, vector<4x16x128xbf16>
    %52 = vector.shape_cast %51 : vector<4x16x128xbf16> to vector<64x128xbf16>
    %c1_49 = arith.constant 1 : index
    %c0_50 = arith.constant 0 : index
    %c0_51 = arith.constant 0 : index
    %53 = vector.load %arg7[%c1_49, %c0_50, %c0_51] : memref<9x128x128xbf16, #tpu.memory_space<vmem>>, vector<1x128x128xbf16>
    %54 = vector.shape_cast %53 : vector<1x128x128xbf16> to vector<128x128xbf16>
    %cst_52 = arith.constant dense<0.000000e+00> : vector<64x128xf32>
    %55 = tpu.matmul %52, %54, %cst_52 {dimension_numbers = #tpu.dot_dimension_numbers<[1], [0], [0], [1], [0, 0, 1, 1], [], []>} : vector<64x128xbf16>, vector<128x128xbf16>, vector<64x128xf32> -> vector<64x128xf32>
    %56 = arith.addf %50, %55 : vector<64x128xf32>
    %c0_53 = arith.constant 0 : index
    %c2 = arith.constant 2 : index
    %c0_54 = arith.constant 0 : index
    %57 = vector.load %arg9[%c0_53, %c2, %c0_54] : memref<6x18x128xbf16, #tpu.memory_space<vmem>>, vector<4x16x128xbf16>
    %58 = vector.shape_cast %57 : vector<4x16x128xbf16> to vector<64x128xbf16>
    %c2_55 = arith.constant 2 : index
    %c0_56 = arith.constant 0 : index
    %c0_57 = arith.constant 0 : index
    %59 = vector.load %arg7[%c2_55, %c0_56, %c0_57] : memref<9x128x128xbf16, #tpu.memory_space<vmem>>, vector<1x128x128xbf16>
    %60 = vector.shape_cast %59 : vector<1x128x128xbf16> to vector<128x128xbf16>
    %cst_58 = arith.constant dense<0.000000e+00> : vector<64x128xf32>
    %61 = tpu.matmul %58, %60, %cst_58 {dimension_numbers = #tpu.dot_dimension_numbers<[1], [0], [0], [1], [0, 0, 1, 1], [], []>} : vector<64x128xbf16>, vector<128x128xbf16>, vector<64x128xf32> -> vector<64x128xf32>
    %62 = arith.addf %56, %61 : vector<64x128xf32>
    %c1_59 = arith.constant 1 : index
    %c0_60 = arith.constant 0 : index
    %c0_61 = arith.constant 0 : index
    %63 = vector.load %arg9[%c1_59, %c0_60, %c0_61] : memref<6x18x128xbf16, #tpu.memory_space<vmem>>, vector<4x16x128xbf16>
    %64 = vector.shape_cast %63 : vector<4x16x128xbf16> to vector<64x128xbf16>
    %c3 = arith.constant 3 : index
    %c0_62 = arith.constant 0 : index
    %c0_63 = arith.constant 0 : index
    %65 = vector.load %arg7[%c3, %c0_62, %c0_63] : memref<9x128x128xbf16, #tpu.memory_space<vmem>>, vector<1x128x128xbf16>
    %66 = vector.shape_cast %65 : vector<1x128x128xbf16> to vector<128x128xbf16>
    %cst_64 = arith.constant dense<0.000000e+00> : vector<64x128xf32>
    %67 = tpu.matmul %64, %66, %cst_64 {dimension_numbers = #tpu.dot_dimension_numbers<[1], [0], [0], [1], [0, 0, 1, 1], [], []>} : vector<64x128xbf16>, vector<128x128xbf16>, vector<64x128xf32> -> vector<64x128xf32>
    %68 = arith.addf %62, %67 : vector<64x128xf32>
    %c1_65 = arith.constant 1 : index
    %c1_66 = arith.constant 1 : index
    %c0_67 = arith.constant 0 : index
    %69 = vector.load %arg9[%c1_65, %c1_66, %c0_67] : memref<6x18x128xbf16, #tpu.memory_space<vmem>>, vector<4x16x128xbf16>
    %70 = vector.shape_cast %69 : vector<4x16x128xbf16> to vector<64x128xbf16>
    %c4 = arith.constant 4 : index
    %c0_68 = arith.constant 0 : index
    %c0_69 = arith.constant 0 : index
    %71 = vector.load %arg7[%c4, %c0_68, %c0_69] : memref<9x128x128xbf16, #tpu.memory_space<vmem>>, vector<1x128x128xbf16>
    %72 = vector.shape_cast %71 : vector<1x128x128xbf16> to vector<128x128xbf16>
    %cst_70 = arith.constant dense<0.000000e+00> : vector<64x128xf32>
    %73 = tpu.matmul %70, %72, %cst_70 {dimension_numbers = #tpu.dot_dimension_numbers<[1], [0], [0], [1], [0, 0, 1, 1], [], []>} : vector<64x128xbf16>, vector<128x128xbf16>, vector<64x128xf32> -> vector<64x128xf32>
    %74 = arith.addf %68, %73 : vector<64x128xf32>
    %c1_71 = arith.constant 1 : index
    %c2_72 = arith.constant 2 : index
    %c0_73 = arith.constant 0 : index
    %75 = vector.load %arg9[%c1_71, %c2_72, %c0_73] : memref<6x18x128xbf16, #tpu.memory_space<vmem>>, vector<4x16x128xbf16>
    %76 = vector.shape_cast %75 : vector<4x16x128xbf16> to vector<64x128xbf16>
    %c5_74 = arith.constant 5 : index
    %c0_75 = arith.constant 0 : index
    %c0_76 = arith.constant 0 : index
    %77 = vector.load %arg7[%c5_74, %c0_75, %c0_76] : memref<9x128x128xbf16, #tpu.memory_space<vmem>>, vector<1x128x128xbf16>
    %78 = vector.shape_cast %77 : vector<1x128x128xbf16> to vector<128x128xbf16>
    %cst_77 = arith.constant dense<0.000000e+00> : vector<64x128xf32>
    %79 = tpu.matmul %76, %78, %cst_77 {dimension_numbers = #tpu.dot_dimension_numbers<[1], [0], [0], [1], [0, 0, 1, 1], [], []>} : vector<64x128xbf16>, vector<128x128xbf16>, vector<64x128xf32> -> vector<64x128xf32>
    %80 = arith.addf %74, %79 : vector<64x128xf32>
    %c2_78 = arith.constant 2 : index
    %c0_79 = arith.constant 0 : index
    %c0_80 = arith.constant 0 : index
    %81 = vector.load %arg9[%c2_78, %c0_79, %c0_80] : memref<6x18x128xbf16, #tpu.memory_space<vmem>>, vector<4x16x128xbf16>
    %82 = vector.shape_cast %81 : vector<4x16x128xbf16> to vector<64x128xbf16>
    %c6 = arith.constant 6 : index
    %c0_81 = arith.constant 0 : index
    %c0_82 = arith.constant 0 : index
    %83 = vector.load %arg7[%c6, %c0_81, %c0_82] : memref<9x128x128xbf16, #tpu.memory_space<vmem>>, vector<1x128x128xbf16>
    %84 = vector.shape_cast %83 : vector<1x128x128xbf16> to vector<128x128xbf16>
    %cst_83 = arith.constant dense<0.000000e+00> : vector<64x128xf32>
    %85 = tpu.matmul %82, %84, %cst_83 {dimension_numbers = #tpu.dot_dimension_numbers<[1], [0], [0], [1], [0, 0, 1, 1], [], []>} : vector<64x128xbf16>, vector<128x128xbf16>, vector<64x128xf32> -> vector<64x128xf32>
    %86 = arith.addf %80, %85 : vector<64x128xf32>
    %c2_84 = arith.constant 2 : index
    %c1_85 = arith.constant 1 : index
    %c0_86 = arith.constant 0 : index
    %87 = vector.load %arg9[%c2_84, %c1_85, %c0_86] : memref<6x18x128xbf16, #tpu.memory_space<vmem>>, vector<4x16x128xbf16>
    %88 = vector.shape_cast %87 : vector<4x16x128xbf16> to vector<64x128xbf16>
    %c7 = arith.constant 7 : index
    %c0_87 = arith.constant 0 : index
    %c0_88 = arith.constant 0 : index
    %89 = vector.load %arg7[%c7, %c0_87, %c0_88] : memref<9x128x128xbf16, #tpu.memory_space<vmem>>, vector<1x128x128xbf16>
    %90 = vector.shape_cast %89 : vector<1x128x128xbf16> to vector<128x128xbf16>
    %cst_89 = arith.constant dense<0.000000e+00> : vector<64x128xf32>
    %91 = tpu.matmul %88, %90, %cst_89 {dimension_numbers = #tpu.dot_dimension_numbers<[1], [0], [0], [1], [0, 0, 1, 1], [], []>} : vector<64x128xbf16>, vector<128x128xbf16>, vector<64x128xf32> -> vector<64x128xf32>
    %92 = arith.addf %86, %91 : vector<64x128xf32>
    %c2_90 = arith.constant 2 : index
    %c2_91 = arith.constant 2 : index
    %c0_92 = arith.constant 0 : index
    %93 = vector.load %arg9[%c2_90, %c2_91, %c0_92] : memref<6x18x128xbf16, #tpu.memory_space<vmem>>, vector<4x16x128xbf16>
    %94 = vector.shape_cast %93 : vector<4x16x128xbf16> to vector<64x128xbf16>
    %c8 = arith.constant 8 : index
    %c0_93 = arith.constant 0 : index
    %c0_94 = arith.constant 0 : index
    %95 = vector.load %arg7[%c8, %c0_93, %c0_94] : memref<9x128x128xbf16, #tpu.memory_space<vmem>>, vector<1x128x128xbf16>
    %96 = vector.shape_cast %95 : vector<1x128x128xbf16> to vector<128x128xbf16>
    %cst_95 = arith.constant dense<0.000000e+00> : vector<64x128xf32>
    %97 = tpu.matmul %94, %96, %cst_95 {dimension_numbers = #tpu.dot_dimension_numbers<[1], [0], [0], [1], [0, 0, 1, 1], [], []>} : vector<64x128xbf16>, vector<128x128xbf16>, vector<64x128xf32> -> vector<64x128xf32>
    %98 = arith.addf %92, %97 : vector<64x128xf32>
    %cst_96 = arith.constant 0.000000e+00 : f32
    %99 = vector.broadcast %cst_96 : f32 to vector<64x128xf32>
    %100 = arith.maximumf %98, %99 : vector<64x128xf32>
    %101 = vector.shape_cast %100 : vector<64x128xf32> to vector<1x4x16x128xf32>
    %c0_97 = arith.constant 0 : index
    %c0_98 = arith.constant 0 : index
    %c0_99 = arith.constant 0 : index
    %c0_100 = arith.constant 0 : index
    %102 = vector.load %arg8[%c0_97, %c0_98, %c0_99, %c0_100] : memref<1x4x16x128xf32, #tpu.memory_space<vmem>>, vector<1x4x16x128xf32>
    tpu.vector_store %arg8[%c0_97, %c0_98, %c0_99, %c0_100], %101 {strides = array<i32>} : memref<1x4x16x128xf32, #tpu.memory_space<vmem>>, vector<1x4x16x128xf32>,
    return
  }
  func.func @transform_0(%arg0: i32, %arg1: i32) -> (i32, i32, i32, i32) {
    %c0_i32 = arith.constant 0 : i32
    %c0_i32_0 = arith.constant 0 : i32
    %c0_i32_1 = arith.constant 0 : i32
    return %arg0, %arg1, %c0_i32, %c0_i32_0 : i32, i32, i32, i32
  }
  func.func @transform_1(%arg0: i32, %arg1: i32) -> (i32, i32, i32, i32) {
    %c4_i32 = arith.constant 4 : i32
    %0 = arith.muli %arg1, %c4_i32 : i32
    %c1_i32 = arith.constant 1 : i32
    %1 = arith.subi %0, %c1_i32 : i32
    %c0_i32 = arith.constant 0 : i32
    %2 = arith.maxsi %1, %c0_i32 : i32
    %c0_i32_0 = arith.constant 0 : i32
    %c0_i32_1 = arith.constant 0 : i32
    %c0_i32_2 = arith.constant 0 : i32
    return %arg0, %2, %c0_i32_0, %c0_i32_1 : i32, i32, i32, i32
  }
  func.func @transform_2(%arg0: i32, %arg1: i32) -> (i32, i32, i32, i32) {
    %c1_i32 = arith.constant 1 : i32
    %0 = arith.addi %arg1, %c1_i32 : i32
    %c4_i32 = arith.constant 4 : i32
    %1 = arith.muli %0, %c4_i32 : i32
    %c15_i32 = arith.constant 15 : i32
    %2 = arith.minsi %1, %c15_i32 : i32
    %c0_i32 = arith.constant 0 : i32
    %c0_i32_0 = arith.constant 0 : i32
    %c0_i32_1 = arith.constant 0 : i32
    return %arg0, %2, %c0_i32, %c0_i32_0 : i32, i32, i32, i32
  }
  func.func @transform_3(%arg0: i32, %arg1: i32) -> (i32, i32) {
    %c0_i32 = arith.constant 0 : i32
    %c0_i32_0 = arith.constant 0 : i32
    %c0_i32_1 = arith.constant 0 : i32
    return %c0_i32, %c0_i32_0 : i32, i32
  }
  func.func @transform_4(%arg0: i32, %arg1: i32) -> (i32, i32) {
    %c0_i32 = arith.constant 0 : i32
    %c0_i32_0 = arith.constant 0 : i32
    %c0_i32_1 = arith.constant 0 : i32
    return %c0_i32, %c0_i32_0 : i32, i32
  }
  func.func @transform_5(%arg0: i32, %arg1: i32) -> (i32, i32, i32) {
    %c0_i32 = arith.constant 0 : i32
    %c0_i32_0 = arith.constant 0 : i32
    %c0_i32_1 = arith.constant 0 : i32
    %c0_i32_2 = arith.constant 0 : i32
    return %c0_i32, %c0_i32_0, %c0_i32_1 : i32, i32, i32
  }
  func.func @transform_6(%arg0: i32, %arg1: i32) -> (i32, i32, i32, i32) {
    %c0_i32 = arith.constant 0 : i32
    %c0_i32_0 = arith.constant 0 : i32
    %c0_i32_1 = arith.constant 0 : i32
    return %arg0, %arg1, %c0_i32, %c0_i32_0 : i32, i32, i32, i32
  }
}

</mosaic_0001>

<bundles_post_ra>
// kernel: tpu_custom_call.1
= control target key start
LH: loop header
LB: loop body
LE: loop exit
PB: predicated region body
PF: predicated region fallthrough
CT: control target
= control target key end

     0   :  { %s5244_s0 = inlined_call_operand.hbm [shape: bf16[2,16,16,36], index: 0, kind: input, shape index: {}]   ;;  %s5245_s1 = inlined_call_operand.hbm [shape: bf16[2,16,16,36], index: 1, kind: input, shape index: {}]   ;;  %s5246_s2 = inlined_call_operand.hbm [shape: bf16[2,16,16,36], index: 2, kind: input, shape index: {}]   ;;  %s5247_s3 = inlined_call_operand.hbm [shape: bf16[36,256], index: 3, kind: input, shape index: {}]   ;;  %s5248_s4 = inlined_call_operand.vmem [shape: f32[1,256], index: 4, kind: input, shape index: {}]   ;;  %s5249_s5 = inlined_call_operand.hbm [shape: bf16[9,128,128], index: 5, kind: input, shape index: {}]   ;;  %s5250_s6 = inlined_call_operand.hbm [shape: f32[2,16,16,128], index: 6, kind: output, shape index: {}]  }
   0x1   :  { %5278 = sst [smem:[#allocation32_spill]] %s5244_s0 }
   0x2   :  { %5279 = sst [smem:[#allocation33_spill]] %s5245_s1 }
   0x3   :  { %5280 = sst [smem:[#allocation34_spill]] %s5246_s2 }
   0x4   :  { %5281 = sst [smem:[#allocation35_spill]] %s5247_s3 }
   0x5   :  { %5282 = sst [smem:[#allocation36_spill]] %s5248_s4 }
   0x6   :  { %5283 = sst [smem:[#allocation37_spill]] %s5249_s5 }
   0x7   :  { %5284 = sst [smem:[#allocation38_spill]] %s5250_s6 }
   0x8   :  { %11 = vsyncpa [#allocation4], 0 }
   0x9   :  { %13 = vsyncpa [#allocation4 + $0x1], 0 }
   0xa   :  { %14 = vsyncpa [#allocation7], 0 }
   0xb   :  { %16 = vsyncpa [#allocation7 + $0x1], 0 }
   0xc   :  { %17 = vsyncpa [#allocation10], 0 }
   0xd   :  { %18 = vsyncpa [#allocation5], 0 }
   0xe   :  { %20 = vsyncpa [#allocation5 + $0x1], 0  ;;  %s4281_s21 = smov 0   ;;  %s4283_s22 = smov 0  }
   0xf   :  { %s4285_s23 = smov 0   ;;  %s4287_s24 = smov 0  }
  0x10   :  { %s4289_s25 = smov 0   ;;  %s4291_s26 = smov 0  }
  0x11   :  { %s4293_s27 = smov 0   ;;  %s4295_s28 = smov 0  }
  0x12   :  { %s4297_s29 = smov 0   ;;  %s4299_s30 = smov 0  }
  0x13   :  { %s4301_s7 = smov 0   ;;  %s4303_s8 = smov 0  }
  0x14   :  { %s4305_s9 = smov 0   ;;  %s4307_s10 = smov 0  }
  0x15 LB: > { %5285 = sst [smem:[#allocation18_spill]] %s4177_s21  ;;  %s4352_s11 = sadd.s32 4294967295, %s4229_s10   ;;  %s4229_s10 = sphi %s4307_s10, %s26_s10   ;;  %s4225_s9 = sphi %s4305_s9, %s5375_s9   ;;  %s4221_s8 = sphi %s4303_s8, %s5374_s8   ;;  %s4217_s7 = sphi %s4301_s7, %s5373_s7   ;;  %s4213_s30 = sphi %s4299_s30, %s5383_s30   ;;  %s4209_s29 = sphi %s4297_s29, %s5382_s29   ;;  %s4205_s28 = sphi %s4295_s28, %s5381_s28   ;;  %s4201_s27 = sphi %s4293_s27, %s5380_s27   ;;  %s4197_s26 = sphi %s4291_s26, %s5379_s26   ;;  %s4193_s25 = sphi %s4289_s25, %s5378_s25   ;;  %s4189_s24 = sphi %s4287_s24, %s5370_s24   ;;  %s4185_s23 = sphi %s4285_s23, %s5377_s23   ;;  %s4181_s22 = sphi %s4283_s22, %s5369_s22   ;;  %s4177_s21 = sphi %s4281_s21, %s5368_s21  }
  0x16   : > { %5286 = sst [smem:[#allocation19_spill]] %s4181_s22  ;;  %p3097_p0 = scmp.ge.s32.totalorder %s4229_s10, 1 }
  0x17   : > { %5287 = sst [smem:[#allocation20_spill]] %s4185_s23  ;;  %p5252_p1 = scmp.eq.s32.totalorder %s4352_s11, 0 }
  0x18   : > { %5288 = sst [smem:[#allocation21_spill]] %s4193_s25  ;;  %p234_p3 = scmp.lt.s32.totalorder %s4229_s10, 9 }
  0x19   : > { %5289 = sst [smem:[#allocation22_spill]] %s4213_s30  ;;  %s4231_s13 = smov [#allocation9]  }
  0x1a   : > { %5290 = sst [smem:[#allocation23_spill]] %s4217_s7  ;;  %p4358_p4 = pnand %p3097_p0, %p234_p3 }
  0x1b   : > { %5291 = sst [smem:[#allocation24_spill]] %s4221_s8  ;;  %s246_s14 = sshll.u32 %s4231_s13, 4  ;;  %s247_s14 = int_to_ptr.vmem [resolvable:$true] %s246_s14 }
  0x1c   : > { %5292 = sst [smem:[#allocation25_spill]] %s4225_s9  ;;  %p3674_p5 = pneg %p4358_p4 }
  0x1d   : > { %s5293_s12 = scalar_select %p4358_p4, 1, 0 }
  0x1e   : > { %p4366_p6 = pnand %p3674_p5, %p5252_p1  ;;  %s5296_s3 = sld [smem:[#allocation35_spill]] }
  0x1f   : > { %5294 = sst [smem:[#allocation26_spill]] %s5293_s12 }
  0x20   : > { %p5268_p8 = pneg %p4366_p6 }
  0x24   : > { %s3925_s18 = scalar_lea.hbm %s5296_s3, 640 }
  0x25   : > { %p3926_p7 = scmp.ne.s32.totalorder %s5296_s3, %s3925_s18  ;;  %p3932_p11 = scmp.lt.u32.totalorder %s3925_s18, %s5296_s3 }
  0x27   : > { %p3928_p9 = pnand %p5268_p8, %p3926_p7 }
  0x29   : > { %p3929_p10 = pneg %p3928_p9 }
  0x2b   : > { %p3934_p12 = pnand %p3932_p11, %p3929_p10 }
  0x2d   : > { %3937 = shalt.err (!%p3934_p12)
}
  0x2e   : > { %s3938_s16 = scalar_lea.vmem %s247_s14, 640  ;;  %p3946_p5 = scmp.lt.s32.totalorder %s247_s14, %s247_s14 }
  0x2f   : > { %p3939_p13 = scmp.ne.s32.totalorder %s247_s14, %s3938_s16  ;;  %p3947_p2 = scmp.lt.s32.totalorder %s3938_s16, %s3938_s16 }
  0x31   : > { %p3941_p0 = pnand %p3939_p13, %p5268_p8  ;;  %p3948_p1 = por %p3947_p2, %p3946_p5 }
  0x33   : > { %p3942_p3 = pneg %p3941_p0 }
  0x35   : > { %p3949_p4 = pnand %p3948_p1, %p3942_p3 }
  0x37   : > { %3952 = shalt.err (!%p3949_p4)
}
  0x38   : > { %s4232_s17 = smov 128   ;;  %s4233_s6 = smov 8  }
  0x39   : > { %3677 = dma.hbm_to_vmem [thread:$0]  (!%p4366_p6), %s5296_s3, 640, %s247_s14, [#allocation10], %s4232_s17, %s4232_s17, %s4233_s6  }
  0x3a   : > { %s35_s20 = sadd.s32 1, %s4221_s8  ;;  %s38_s13 = sadd.s32 1, %s4225_s9 }
  0x3b   : > { %p36_p1 = scmp.ge.s32.totalorder %s35_s20, 4  ;;  %p5267_p2 = scmp.eq.s32.totalorder %s4229_s10, 0 }
  0x3c   : > { %s3091_s16 = sshll.u32 %s4221_s8, 2  ;;  %s83_s7 = sadd.s32 1, %s4197_s26 }
  0x3d   : > { %s5385_s20 = smov (%p36_p1, %s35_s20), 0  ;;  %s5387_s13 = smov (!%p36_p1, %s38_s13), %s4225_s9 }
  0x3e   : > { %5297 = sst [smem:[#allocation27_spill]] %s5385_s20  ;;  %s43_s30 = ssub.s32 %s4221_s8, %s5385_s20 }
  0x3f   : > { %s3092_s4 = sadd.s32 4294967295, %s3091_s16  ;;  %p40_p4 = scmp.ge.s32.totalorder %s5387_s13, 2 }
  0x40   : > { %p72_p7 = scmp.gt.s32.totalorder %s3092_s4, 0  ;;  %s3093_s14 = sshll.u32 %s5385_s20, 2 }
  0x41   : > { %p90_p9 = scmp.ne.s32.totalorder %s4197_s26, %s4193_s25  ;;  %s5389_s13 = smov (%p40_p4, %s5387_s13), 0 }
  0x42   : > { %5298 = sst [smem:[#allocation28_spill]] %s5389_s13  ;;  %s5391_s4 = smov (!%p72_p7, %s3092_s4), 0 }
  0x43   : > { %s4409_s17 = ssub.s32 %s4225_s9, %s5389_s13  ;;  %s3094_s6 = sadd.s32 4294967295, %s3093_s14 }
  0x44   : > { %5299 = sst [smem:[#allocation29_spill]] %s4409_s17  ;;  %s4412_s18 = sor.u32 %s43_s30, %s4409_s17 }
  0x45   : > { %p76_p10 = scmp.gt.s32.totalorder %s3094_s6, 0  ;;  %p4417_p12 = por %p90_p9, %p5267_p2 }
  0x46   : > { %p96_p13 = scmp.ne.s32.totalorder %s4193_s25, %s4189_s24  ;;  %s4423_s3 = sadd.s32 4, %s3091_s16 }
  0x47   : > { %s5393_s6 = smov (!%p76_p10, %s3094_s6), 0  ;;  %p5301_p3 = scmp.eq.s32.totalorder %s4352_s11, 0 }
  0x48   : > { %s79_s13 = ssub.s32 %s5391_s4, %s5393_s6  ;;  %s4433_s12 = sadd.s32 4, %s3093_s14 }
  0x49   : > { %s80_s30 = sor.u32 %s79_s13, %s4409_s17  ;;  %p4429_p5 = por %p96_p13, %p5301_p3 }
  0x4a   : > { %p81_p1 = scmp.eq.s32.totalorder %s80_s30, 0  ;;  %p5266_p7 = scmp.lt.s32.totalorder %s4229_s10, 8 }
  0x4b   : > { %s5302_s20 = scalar_select %p4429_p5, 1, 0 }
  0x4c   : > { %s4437_s2 = scalar_select %p81_p1, %s4197_s26, %s83_s7  }
  0x4d   : > { %5303 = sst [smem:[#allocation30_spill]] %s5302_s20  ;;  %s4441_s24 = sshll.u32 %s4225_s9, 5 }
  0x4e   : > { %s300_s16 = sand.u32 1, %s4229_s10   ;;  %s302_s13 = sand.u32 1, %s4197_s26  }
  0x4f   : > { %s3106_s6 = sshll.u32 %s302_s13, 3  ;;  %s3109_s25 = sshll.u32 %s5391_s4, 1 }
  0x50   : > { %s314_s17 = sadd.s32 %s3109_s25, %s4441_s24  ;;  %s304_s20 = scalar_lea.vmem [#allocation6], %s3106_s6 }
  0x51   : > { %s3111_s21 = sshll.u32 %s314_s17, 6  ;;  %s317_s30 = sshll.u32 %s304_s20, 4  ;;  %s4451_s30 = int_to_ptr.vmem [resolvable:$true] %s317_s30 }
  0x52   : > { %s5304_s1 = sld [smem:[#allocation33_spill]]  ;;  %p4457_p9 = pnand %p5266_p7, %p4417_p12 }
  0x53   : > { %s4234_s4 = smov [#allocation11]  }
  0x54   : > { %s262_s25 = sshll.u32 %s4234_s4, 4  ;;  %p3955_p13 = pneg %p4457_p9  ;;  %s4461_s25 = int_to_ptr.vmem [resolvable:$true] %s262_s25 }
  0x58   : > { %s4449_s14 = scalar_lea.hbm %s5304_s1, %s3111_s21  ;;  %s4463_s21 = scalar_lea.sflag [#allocation7], %s300_s16 }
  0x59   : > { %s3953_s22 = scalar_lea.hbm %s4449_s14, 128  ;;  %s3958_s17 = scalar_lea.hbm %s5304_s1, 4096 }
  0x5a   : > { %p3954_p10 = scmp.ne.s32.totalorder %s4449_s14, %s3953_s22  ;;  %p3959_p12 = scmp.lt.u32.totalorder %s4449_s14, %s5304_s1 }
  0x5b   : > { %p3960_p4 = scmp.lt.u32.totalorder %s3958_s17, %s3953_s22  ;;  %p3962_p7 = scmp.lt.u32.totalorder %s3953_s22, %s4449_s14 }
  0x5c   : > { %p3956_p3 = pnand %p3955_p13, %p3954_p10 }
  0x5d   : > { %p3961_p0 = por %p3960_p4, %p3959_p12 }
  0x5e   : > { %p3957_p1 = pneg %p3956_p3 }
  0x5f   : > { %p3963_p2 = por %p3962_p7, %p3961_p0 }
  0x61   : > { %p3964_p11 = pnand %p3963_p2, %p3957_p1 }
  0x63   : > { %3967 = shalt.err (!%p3964_p11)
}
  0x64   : > { %s3968_s16 = scalar_lea.vmem %s4451_s30, 128  ;;  %s4235_s6 = smov [#allocation6]  }
  0x65   : > { %p3969_p10 = scmp.ne.s32.totalorder %s4451_s30, %s3968_s16  ;;  %s3973_s4 = sshll.u32 %s4235_s6, 4  ;;  %s3974_s4 = int_to_ptr.vmem [resolvable:$false] %s3973_s4 }
  0x66   : > { %s3975_s23 = scalar_lea.vmem %s3974_s4, 256  ;;  %p3976_p5 = scmp.lt.s32.totalorder %s4451_s30, %s3974_s4 }
  0x67   : > { %p3971_p3 = pnand %p3969_p10, %p3955_p13  ;;  %p3977_p4 = scmp.lt.s32.totalorder %s3975_s23, %s3968_s16 }
  0x69   : > { %p3972_p8 = pneg %p3971_p3  ;;  %p3978_p12 = por %p3977_p4, %p3976_p5 }
  0x6b   : > { %p3979_p0 = pnand %p3978_p12, %p3972_p8 }
  0x6d   : > { %3982 = shalt.err (!%p3979_p0)
}
  0x6e   : > { %s5270_s22 = smov 64   ;;  %s5272_s20 = smov 4  }
  0x6f   : > { %3687 = dma.hbm_to_vmem [thread:$0]  (!%p4457_p9), %s4449_s14, 128, %s4451_s30, %s4463_s21, %s5270_s22, %s5270_s22, %s5272_s20  }
  0x70   : > { %s5306_s5 = sld [smem:[#allocation37_spill]]  ;;  %p5307_p2 = pneg %p4366_p6 }
  0x76   : > { %s3983_s13 = scalar_lea.hbm %s5306_s5, 9216 }
  0x77   : > { %p3984_p8 = scmp.ne.s32.totalorder %s5306_s5, %s3983_s13  ;;  %p3990_p7 = scmp.lt.u32.totalorder %s3983_s13, %s5306_s5 }
  0x79   : > { %p3986_p11 = pnand %p3984_p8, %p5307_p2 }
  0x7b   : > { %p3987_p5 = pneg %p3986_p11 }
  0x7d   : > { %p3992_p13 = pnand %p3990_p7, %p3987_p5 }
  0x7f   : > { %3995 = shalt.err (!%p3992_p13)
}
  0x80   : > { %s3996_s30 = scalar_lea.vmem %s4461_s25, 9216  ;;  %p5308_p1 = pmov %p5307_p2 }
  0x81   : > { %p3997_p9 = scmp.ne.s32.totalorder %s4461_s25, %s3996_s30  ;;  %p4004_p4 = scmp.lt.s32.totalorder %s4461_s25, %s4461_s25 }
  0x82   : > { %p4005_p12 = scmp.lt.s32.totalorder %s3996_s30, %s3996_s30 }
  0x83   : > { %p3999_p10 = pnand %p3997_p9, %p5308_p1 }
  0x84   : > { %p4006_p0 = por %p4005_p12, %p4004_p4 }
  0x85   : > { %p4000_p3 = pneg %p3999_p10 }
  0x87   : > { %p4007_p8 = pnand %p4006_p0, %p4000_p3 }
  0x89   : > { %4010 = shalt.err (!%p4007_p8)
}
  0x8a   : > { %3680 = dma.hbm_to_vmem [thread:$0]  (!%p4366_p6), %s5306_s5, 9216, %s4461_s25, [#allocation10], %s5270_s22, %s5270_s22, %s5272_s20  }
  0x8b   : > { %s3090_s15 = sadd.s32 4294967294, %s4229_s10   ;;  %s47_s17 = sadd.s32 1, %s4209_s29 }
  0x8c   : > { %p54_p2 = scmp.ne.s32.totalorder %s4209_s29, %s4205_s28  ;;  %p5309_p11 = scmp.eq.s32.totalorder %s4412_s18, 0 }
  0x8d   : > { %p5311_p5 = scmp.eq.s32.totalorder %s4229_s10, 0  ;;  %p60_p13 = scmp.ne.s32.totalorder %s4205_s28, %s4201_s27 }
  0x8e   : > { %s4529_s19 = scalar_select %p5309_p11, %s4209_s29, %s47_s17  }
  0x8f   : > { %p4533_p7 = por %p5311_p5, %p54_p2  ;;  %p5313_p9 = scmp.eq.s32.totalorder %s4352_s11, 7 }
  0x90   : > { %5310 = sst [smem:[#allocation31_spill]] %s4529_s19  ;;  %p227_p6 = scmp.eq.s32.totalorder %s3090_s15, 7 }
  0x91   : > { %p4541_p1 = por %p5313_p9, %p54_p2  ;;  %p5315_p10 = scmp.eq.s32.totalorder %s4352_s11, 0 }
  0x92   : > { %s276_s18 = sand.u32 1, %s4209_s29   ;;  %p4552_p4 = por %p227_p6, %p60_p13 }
  0x93   : > { %s5314_s16 = scalar_select %p4541_p1, 1, 0 }
  0x94   : > { %p4547_p3 = por %p5315_p10, %p60_p13  ;;  %s3101_s4 = sshll.u32 %s276_s18, 5 }
  0x95   : > { %s5317_s6 = scalar_select %p4552_p4, 1, 0 }
  0x96   : > { %s3290_s23 = sshll.u32 %s4221_s8, 3  ;;  %s280_s7 = scalar_lea.vmem [#allocation3], %s3101_s4 }
  0x97   : > { %s287_s30 = sadd.s32 %s3290_s23, %s4441_s24  ;;  %s290_s17 = sshll.u32 %s280_s7, 4  ;;  %s4563_s17 = int_to_ptr.vmem [resolvable:$true] %s290_s17 }
  0x98   : > { %s3105_s14 = sshll.u32 %s287_s30, 6  ;;  %s5318_s0 = sld [smem:[#allocation32_spill]] }
  0x99   : > { %p5319_p12 = scmp.lt.s32.totalorder %s4229_s10, 8  ;;  %s4573_s4 = scalar_lea.sflag [#allocation4], %s276_s18 }
  0x9b   : > { %p4569_p0 = pnand %p5319_p12, %p4533_p7 }
  0x9d   : > { %p4013_p2 = pneg %p4569_p0 }
  0x9e   : > { %s4561_s15 = scalar_lea.hbm %s5318_s0, %s3105_s14  ;;  %s4016_s13 = scalar_lea.hbm %s5318_s0, 4096 }
  0x9f   : > { %s4011_s23 = scalar_lea.hbm %s4561_s15, 512  ;;  %p4017_p7 = scmp.lt.u32.totalorder %s4561_s15, %s5318_s0 }
  0xa0   : > { %p4012_p8 = scmp.ne.s32.totalorder %s4561_s15, %s4011_s23  ;;  %p4018_p13 = scmp.lt.u32.totalorder %s4016_s13, %s4011_s23 }
  0xa1   : > { %p4020_p6 = scmp.lt.u32.totalorder %s4011_s23, %s4561_s15 }
  0xa2   : > { %p4014_p11 = pnand %p4013_p2, %p4012_p8  ;;  %p4019_p9 = por %p4018_p13, %p4017_p7 }
  0xa4   : > { %p4015_p5 = pneg %p4014_p11  ;;  %p4021_p10 = por %p4020_p6, %p4019_p9 }
  0xa6   : > { %p4022_p12 = pnand %p4021_p10, %p4015_p5 }
  0xa8   : > { %4025 = shalt.err (!%p4022_p12)
}
  0xa9   : > { %s4026_s18 = scalar_lea.vmem %s4563_s17, 512  ;;  %s4238_s7 = smov [#allocation3]  }
  0xaa   : > { %p4027_p8 = scmp.ne.s32.totalorder %s4563_s17, %s4026_s18  ;;  %s4031_s22 = sshll.u32 %s4238_s7, 4  ;;  %s4032_s22 = int_to_ptr.vmem [resolvable:$false] %s4031_s22 }
  0xab   : > { %s4033_s20 = scalar_lea.vmem %s4032_s22, 1024  ;;  %p4034_p1 = scmp.lt.s32.totalorder %s4563_s17, %s4032_s22 }
  0xac   : > { %p4029_p11 = pnand %p4027_p8, %p4013_p2  ;;  %p4035_p7 = scmp.lt.s32.totalorder %s4033_s20, %s4026_s18 }
  0xae   : > { %p4030_p4 = pneg %p4029_p11  ;;  %p4036_p13 = por %p4035_p7, %p4034_p1 }
  0xb0   : > { %p4037_p9 = pnand %p4036_p13, %p4030_p4 }
  0xb2   : > { %4040 = shalt.err (!%p4037_p9)
}
  0xb3   : > { %s5321_s23 = smov 4   ;;  %s5322_s13 = smov 64  }
  0xb4   : > { %s5323_s30 = sld [smem:[#allocation20_spill]]  ;;  %s5324_s14 = sld [smem:[#allocation19_spill]] }
  0xb5   : > { %s5325_s7 = sld [smem:[#allocation18_spill]]  ;;  %s5326_s18 = sld [smem:[#allocation29_spill]] }
  0xb6   : > { %3684 = dma.hbm_to_vmem [thread:$0]  (!%p4569_p0), %s4561_s15, 512, %s4563_s17, %s4573_s4, %s5322_s13, %s5322_s13, %s5321_s23  }
  0xb7   : > { %p5327_p1 = scmp.lt.s32.totalorder %s4423_s3, 15  ;;  %p5328_p4 = scmp.lt.s32.totalorder %s4433_s12, 15 }
  0xb8   : > { %p5329_p6 = scmp.eq.s32.totalorder %s4229_s10, 0  ;;  %p5331_p8 = scmp.eq.s32.totalorder %s4352_s11, 0 }
  0xb9   : > { %s5395_s3 = smov (!%p5327_p1, %s4423_s3), 15  ;;  %s5397_s12 = smov (!%p5328_p4, %s4433_s12), 15 }
  0xba   : > { %s119_s1 = sadd.s32 1, %s5323_s30  ;;  %p126_p2 = scmp.ne.s32.totalorder %s5323_s30, %s5324_s14 }
  0xbb   : > { %s115_s22 = ssub.s32 %s5395_s3, %s5397_s12  ;;  %p132_p5 = scmp.ne.s32.totalorder %s5324_s14, %s5325_s7 }
  0xbc   : > { %s116_s20 = sor.u32 %s115_s22, %s5326_s18  ;;  %p4618_p10 = por %p126_p2, %p5329_p6 }
  0xbd   : > { %p117_p12 = scmp.eq.s32.totalorder %s116_s20, 0  ;;  %p4624_p11 = por %p132_p5, %p5331_p8 }
  0xbe   : > { %s329_s15 = sand.u32 1, %s5323_s30   ;;  %s3114_s4 = sshll.u32 %s5395_s3, 1 }
  0xbf   : > { %s5332_s17 = scalar_select %p4624_p11, 1, 0 }
  0xc0   : > { %s5399_s30 = smov (!%p117_p12, %s5323_s30), %s119_s1  ;;  %s3112_s12 = sshll.u32 %s329_s15, 3 }
  0xc1   : > { %s341_s5 = sadd.s32 %s3114_s4, %s4441_s24  ;;  %s5333_s22 = sld [smem:[#allocation34_spill]] }
  0xc2   : > { %s3116_s14 = sshll.u32 %s341_s5, 6  ;;  %s331_s20 = scalar_lea.vmem [#allocation8], %s3112_s12 }
  0xc3   : > { %s344_s8 = sshll.u32 %s331_s20, 4  ;;  %p5335_p0 = scmp.lt.s32.totalorder %s4229_s10, 8  ;;  %s4638_s8 = int_to_ptr.vmem [resolvable:$true] %s344_s8 }
  0xc5   : > { %p4644_p7 = pnand %p5335_p0, %p4618_p10 }
  0xc7   : > { %s5334_s19 = smov %s5333_s22  ;;  %s4636_s9 = scalar_lea.hbm %s5333_s22, %s3116_s14 }
  0xc8   : > { %s4041_s5 = scalar_lea.hbm %s4636_s9, 128  ;;  %p4043_p9 = pneg %p4644_p7 }
  0xc9   : > { %p4042_p13 = scmp.ne.s32.totalorder %s4636_s9, %s4041_s5  ;;  %s4046_s15 = scalar_lea.hbm %s5334_s19, 4096 }
  0xca   : > { %p4047_p2 = scmp.lt.u32.totalorder %s4636_s9, %s5334_s19  ;;  %p4048_p5 = scmp.lt.u32.totalorder %s4046_s15, %s4041_s5 }
  0xcb   : > { %p4044_p1 = pnand %p4043_p9, %p4042_p13  ;;  %p4050_p10 = scmp.lt.u32.totalorder %s4041_s5, %s4636_s9 }
  0xcc   : > { %p4049_p6 = por %p4048_p5, %p4047_p2 }
  0xcd   : > { %p4045_p4 = pneg %p4044_p1 }
  0xce   : > { %p4051_p12 = por %p4050_p10, %p4049_p6 }
  0xd0   : > { %p4052_p8 = pnand %p4051_p12, %p4045_p4 }
  0xd2   : > { %4055 = shalt.err (!%p4052_p8)
}
  0xd3   : > { %s4056_s12 = scalar_lea.vmem %s4638_s8, 128  ;;  %s4239_s14 = smov [#allocation8]  }
  0xd4   : > { %p4057_p0 = scmp.ne.s32.totalorder %s4638_s8, %s4056_s12  ;;  %s4061_s7 = sshll.u32 %s4239_s14, 4  ;;  %s4062_s7 = int_to_ptr.vmem [resolvable:$false] %s4061_s7 }
  0xd5   : > { %s4063_s18 = scalar_lea.vmem %s4062_s7, 256  ;;  %p4064_p11 = scmp.lt.s32.totalorder %s4638_s8, %s4062_s7 }
  0xd6   : > { %p4059_p13 = pnand %p4057_p0, %p4043_p9  ;;  %p4065_p2 = scmp.lt.s32.totalorder %s4063_s18, %s4056_s12 }
  0xd8   : > { %p4060_p1 = pneg %p4059_p13  ;;  %p4066_p5 = por %p4065_p2, %p4064_p11 }
  0xda   : > { %p4067_p6 = pnand %p4066_p5, %p4060_p1 }
  0xdc   : > { %4070 = shalt.err (!%p4067_p6)
}
  0xdd   : > { %3690 = dma.hbm_to_vmem [thread:$0]  (!%p4644_p7), %s4636_s9, 128, %s4638_s8, %s4463_s21, %s5322_s13, %s5322_s13, %s5321_s23  }
  0xde   : > { %s5337_s22 = sld [smem:[#allocation26_spill]] }
  0xe4   : > { %p5338_p9 = scmp.ne.s32.totalorder %s5337_s22, 0 }
  0xe5   : > { %s4680_s20 = sand.u32 (!%p5338_p9), 1, %s4205_s28  }
  0xe6   : > { %356 = sbr.rel (%p5338_p9) target bundleno = 885 (0x375), region = 44  ;;  %s3118_s5 = sshll.u32 (!%p5338_p9), %s4680_s20, 5 }
  0xe7   : > { %s359_s24 = scalar_lea.sflag (!%p5338_p9), [#allocation4], %s4680_s20  ;;  %s4684_s1 = scalar_lea.vmem (!%p5338_p9), [#allocation3], %s3118_s5 }
  0xed   : > { %4156 = dma.done.wait (%p4547_p3), %s359_s24, 512  }
  0xee   : > { %4158 = vsyncadd (%p4547_p3), %s359_s24, 4294966784  ;;  %s5339_s8 = sld [smem:[#allocation21_spill]]  ;;  %s5340_s9 = sld [smem:[#allocation30_spill]] }
  0xef   : > { %s367_s21 = sand.u32 1, %s4352_s11  }
  0xf0   : > { %s368_s3 = scalar_lea.sflag [#allocation7], %s367_s21 }
  0xf4   : > { %s369_s23 = sand.u32 1, %s5339_s8   ;;  %p5341_p11 = scmp.ne.s32.totalorder %s5340_s9, 0 }
  0xf5   : > { %s4692_s13 = sshll.u32 %s369_s23, 3 }
  0xf6   : > { %s371_s15 = scalar_lea.vmem [#allocation6], %s4692_s13 }
  0xf7   : > { %4160 = dma.done.wait (%p5341_p11), %s368_s3, 128  }
  0xf8   : > { %4162 = vsyncadd (%p5341_p11), %s368_s3, 4294967168  ;;  %s5342_s0 = sld [smem:[#allocation19_spill]]  ;;  %p5343_p3 = scmp.ne.s32.totalorder %s5332_s17, 0 }
  0xfe   : > { %s378_s4 = sand.u32 1, %s5342_s0  }
  0xff   : > { %s4700_s25 = sshll.u32 %s378_s4, 3 }
 0x100   : > { %s380_s12 = scalar_lea.vmem [#allocation8], %s4700_s25 }
 0x101   : > { %4164 = dma.done.wait (%p5343_p3), %s368_s3, 128  }
 0x102   : > { %4166 = vsyncadd (%p5343_p3), %s368_s3, 4294967168  ;;  %p5344_p7 = scmp.eq.s32.totalorder %s4352_s11, 0 }
 0x104   : > { %4168 = dma.done.wait (%p5344_p7), [#allocation10], 9856   ;;  %p5345_p4 = pmov %p5344_p7 }
 0x105   : > { %v4240_v0 = vmov 0.0   ;;  %vm4241_vm0 = vmmov 0   ;;  %v4242_v1 = vmov 0   ;;  %v3824_v2 = vld [vmem:[#allocation9 + $0x4] ss:$8 sps:$4 sm:$0xff]   ;;  %vm521_vm1 = vcmask 1041408  }
 0x106   : > { %4170 = vsyncadd (%p5345_p4), [#allocation10], 4294957440  ;;  %3422 = vmatprep.subr.bf16.mxu1 %v4240_v0  ;;  %3428 = vmatprep.mubr.msk.bf16.mxu1 %vm4241_vm0, %v4240_v0  ;;  %v3826_v3 = vld [vmem:[#allocation9] ss:$8 sps:$4 sm:$0xff]   ;;  %v3828_v5 = vld [vmem:[#allocation9 + $0x14] ss:$8 sps:$4 sm:$0xff]   ;;  %v453_v22 = vlaneseq }
 0x107   : > { %560 = vmatprep.mubr.bf16.mxu0 %v4242_v1  ;;  %528 = vmatprep.subr.bf16.mxu0 %v3824_v2  ;;  %v3827_v4 = vld [vmem:[#allocation9] ss:$8 sps:$4 sm:$0xff]   ;;  %v3830_v6 = vld [vmem:[#allocation9 + $0x10] ss:$8 sps:$4 sm:$0xff]   ;;  %vm508_vm2 = vcmask 293888   ;;  %s5346_s14 = sld [smem:[#allocation36_spill]] }
 0x108   : > { %3423 = vmatpush3.bf16.msra.mxu1 %v3826_v3  ;;  %529 = vmatpush1.bf16.msra.mxu0 %v3827_v4  ;;  %v3831_v7 = vld [vmem:[#allocation9 + $0x10] ss:$8 sps:$4 sm:$0xff]   ;;  %v450_v8 = vld [vmem:[#allocation9 + $0x20] sm:$0x33]  ;;  %v3841_v16 = vld [vmem:[#allocation11] sm:$0xff]   ;;  %v4730_v23 = vshrl.u32 %v453_v22, 7 }
 0x109   : > { %3424 = vmatprep.subr.bf16.mxu1 %v4240_v0  ;;  %530 = vmatprep.subr.bf16.mxu0 %v3828_v5  ;;  %v3133_v9 = vcombine.high %v450_v8, %v450_v8  ;;  %v3833_v10 = vld [vmem:[#allocation9 + $0x20] ss:$0 sps:$4 sm:$0x33]   ;;  %v3132_v11 = vcombine.low %v450_v8, %v450_v8  ;;  %v3842_v17 = vld [vmem:[#allocation11 + $0x8] sm:$0xff]   ;;  %v3837_v18 = vld [vmem:[%s4684_s1 + $0x8] sm:$0xff]   ;;  %vm757_vm3 = vcmask 1040384  }
 0x10a   : > { %v647_v12 = vsel %vm521_vm1, %v3833_v10, 0  ;;  %v3835_v14 = vld [vmem:[%s371_s15] sm:$0xff]   ;;  %v3840_v19 = vld [vmem:[%s380_s12] sm:$0xff]   ;;  %v459_v25 = vsub.s32 1, %v4730_v23  ;;  %vm758_vm4 = vsmask.f32 256 }
 0x10b   : > { %v523_v13 = vsel %vm521_vm1, %v3132_v11, 0  ;;  %v3836_v15 = vld [vmem:[%s4684_s1] sm:$0xff]   ;;  %v3838_v20 = vld [vmem:[%s4684_s1 + $0x10] sm:$0xff]   ;;  %v3839_v21 = vld [vmem:[%s4684_s1 + $0x18] sm:$0xff]   ;;  %vm778_vm6 = vsmask.f32 7938 }
 0x10c   : > { %3425 = vmatpush3.bf16.msra.mxu1 %v3830_v6  ;;  %531 = vmatpush1.bf16.msra.mxu0 %v3831_v7  ;;  %v3843_v27 = vld [vmem:[#allocation11 + $0x10] sm:$0xff]   ;;  %v3844_v28 = vld [vmem:[#allocation11 + $0x40] sm:$0xff]   ;;  %vm4742_vm5 = vmand %vm757_vm3, %vm758_vm4  ;;  %s5351_s7 = sld [smem:[#allocation22_spill]]  ;;  %v455_v5 = vsub.s32 0, %v4730_v23  ;;  %vm826_vm9 = vcmask 1043456   ;;  %vm1452_vm15 = vcmask 1042432  }
 0x10d   : > { %3426 = vmatprep.subr.bf16.mxu1 %v4240_v0  ;;  %3134 = vmatprep.subr.msk.bf16.mxu0 %vm521_vm1, %v3133_v9  ;;  %v4735_v24 = vld [vmem:[%s5346_s14] sm:$0x3]  ;;  %v763_v31 = vld [vmem:[#allocation2 + $0xc] sm:$0x1]  ;;  %vm4751_vm7 = vmand %vm757_vm3, %vm778_vm6  ;;  %vm804_vm10 = vsmask.f32 4368 }
 0x10e   : > { %v4739_v26 = vrot.slane %v4735_v24, %v459_v25  ;;  %v760_v30 = vld [vmem:[#allocation2] sm:$0x1]  ;;  %v764_v33 = vsel %vm4742_vm5, 0, %v763_v31  ;;  %v3845_v34 = vld [vmem:[#allocation11 + $0x18] sm:$0xff]   ;;  %v783_v38 = vld [vmem:[#allocation2 + $0x14] sm:$0x1]  ;;  %v4789_v7 = vrot.slane %v4735_v24, %v455_v5 }
 0x10f   : > { %v761_v32 = vsel %vm4742_vm5, 0, %v760_v30  ;;  %765 = vst [vmem:[#allocation2 + $0xc] sm:$0x1] %v764_v33  ;;  %v780_v36 = vld [vmem:[#allocation2 + $0x8] sm:$0x1]  ;;  %v3846_v39 = vld [vmem:[#allocation11 + $0x48] sm:$0xff]   ;;  %vm4811_vm11 = vmand %vm826_vm9, %vm778_vm6 }
 0x110   : > { %3427 = vmatpush3.bf16.msra.mxu1 %v647_v12  ;;  %533 = vmatpush1.bf16.msra.mxu0 %v523_v13  ;;  %762 = vst [vmem:[#allocation2] sm:$0x1] %v761_v32  ;;  %v781_v37 = vsel %vm4751_vm7, 0, %v780_v36  ;;  %v784_v40 = vsel %vm4751_vm7, 0, %v783_v38  ;;  %v3847_v41 = vld [vmem:[#allocation11 + $0x20] sm:$0xff]   ;;  %v3848_v42 = vld [vmem:[#allocation11 + $0x50] sm:$0xff]   ;;  %vm4824_vm12 = vmor %vm758_vm4, %vm804_vm10 }
 0x111   : > { %3432 = vmatprep.subr.bf16.mxu1 %v4240_v0  ;;  %3442 = vmatprep.subr.bf16.mxu0 %v3841_v16  ;;  %782 = vst [vmem:[#allocation2 + $0x8] sm:$0x1] %v781_v37  ;;  %785 = vst [vmem:[#allocation2 + $0x14] sm:$0x1] %v784_v40  ;;  %v3849_v43 = vld [vmem:[#allocation11 + $0x28] sm:$0xff]   ;;  %v3850_v44 = vld [vmem:[#allocation11 + $0x58] sm:$0xff]  }
 0x112   : > { %v766_v45 = vld [vmem:[#allocation2 + $0x18] sm:$0x1]  ;;  %v3851_v46 = vld [vmem:[#allocation11 + $0x30] sm:$0xff]   ;;  %v3852_v48 = vld [vmem:[#allocation11 + $0x60] sm:$0xff]   ;;  %p745_p10 = scmp.eq.s32.totalorder %s5351_s7, 0  ;;  %p751_p12 = scmp.eq.s32.totalorder %s5351_s7, 3 }
 0x113   : > { %3429 = vmatmul.mubr.msk.bf16.vlgmr.msra.gmra.mrb[0].mxu1 %vm508_vm2, %v3835_v14  ;;  %3135 = vmatmul.mubr.msk.bf16.vlgmr.msra.gmra.mrb[0].mxu0 %vm508_vm2, %v3836_v15  ;;  %v767_v47 = vsel %vm4742_vm5, 0, %v766_v45  ;;  %v786_v49 = vld [vmem:[#allocation2 + $0x20] sm:$0x1]  ;;  %v3853_v51 = vld [vmem:[#allocation11 + $0x38] sm:$0xff]   ;;  %v769_v52 = vld [vmem:[#allocation2 + $0x24] sm:$0x1] }
 0x114   : > { %3433 = vmatpush3.bf16.msra.mxu1 %v3826_v3  ;;  %570 = vmatprep.mubr.bf16.mxu0 %v4242_v1  ;;  %768 = vst [vmem:[#allocation2 + $0x18] sm:$0x1] %v767_v47  ;;  %v787_v50 = vsel %vm4751_vm7, 0, %v786_v49  ;;  %v3854_v53 = vld [vmem:[#allocation11 + $0x68] sm:$0xff]   ;;  %v770_v54 = vsel %vm4742_vm5, 0, %v769_v52  ;;  %v4765_v55 = vld [vmem:[#allocation11 + $0x80] sm:$0xff]  }
 0x115   : > { %3434 = vmatprep.subr.bf16.mxu1 %v4240_v0  ;;  %3438 = vmatprep.mubr.msk.bf16.mxu1 %vm4241_vm0, %v4240_v0  ;;  %788 = vst [vmem:[#allocation2 + $0x20] sm:$0x1] %v787_v50  ;;  %771 = vst [vmem:[#allocation2 + $0x24] sm:$0x1] %v770_v54  ;;  %v789_v56 = vld [vmem:[#allocation2 + $0x2c] sm:$0x1] }
 0x116   : > { %3443 = vmatpush3.bf16.msra.mxu0 %v3841_v16  ;;  %v790_v57 = vsel %vm4751_vm7, 0, %v789_v56  ;;  %v3858_v58 = vld [vmem:[#allocation11 + $0x70] sm:$0xff]   ;;  %v3860_v59 = vld [vmem:[#allocation11 + $0x78] sm:$0xff]   ;;  %v4770_v60 = vld [vmem:[#allocation11 + $0xc0] sm:$0xff]   ;;  %s746_s18 = scalar_select %p745_p10, 1, 0 }
 0x117   : > { %3444 = vmatprep.subr.bf16.mxu0 %v3842_v17  ;;  %791 = vst [vmem:[#allocation2 + $0x2c] sm:$0x1] %v790_v57  ;;  %v772_v61 = vld [vmem:[#allocation2 + $0x30] sm:$0x1]  ;;  %v792_v62 = vld [vmem:[#allocation2 + $0x38] sm:$0x1] }
 0x118   : > { %3435 = vmatpush3.bf16.msra.mxu1 %v3830_v6  ;;  %v773_v63 = vsel %vm4742_vm5, 0, %v772_v61  ;;  %v795_v3 = vld [vmem:[#allocation2 + $0x44] sm:$0x1]  ;;  %v4786_v6 = vld [vmem:[%s5346_s14] ss:$0 sm:$0xff]  ;;  %v747_v8 = vstv %s746_s18  ;;  %vm1453_vm0 = vcmask 1046532  }
 0x119   : > { %3436 = vmatprep.subr.bf16.mxu1 %v4240_v0  ;;  %v793_v0 = vsel %vm4751_vm7, 0, %v792_v62  ;;  %774 = vst [vmem:[#allocation2 + $0x30] sm:$0x1] %v773_v63  ;;  %v796_v4 = vsel %vm4751_vm7, 0, %v795_v3  ;;  %vm4792_vm8 = vcmp.eq.s32.totalorder %v747_v8, 1  ;;  %s5362_s1 = sld [smem:[#allocation23_spill]] }
 0x11a   : > { %3445 = vmatpush3.bf16.msra.mxu0 %v3842_v17  ;;  %794 = vst [vmem:[#allocation2 + $0x38] sm:$0x1] %v793_v0  ;;  %797 = vst [vmem:[#allocation2 + $0x44] sm:$0x1] %v796_v4  ;;  %v828_v37 = vld [vmem:[#allocation2] sm:$0xf] }
 0x11b   : > { %3136 = vmatmul.mubr.msk.bf16.gmra.mrb[4].mxu0 %vm508_vm2, %v3837_v18  ;;  %3446 = vmatprep.subr.bf16.mxu0 %v3843_v27  ;;  %v832_v5 = vld [vmem:[#allocation2 + $0x8] sm:$0x1]  ;;  %v978_v8 = vld [vmem:[#allocation2 + $0x14] sm:$0x1]  ;;  %vm1183_vm13 = vsmask.f32 3328 }
 0x11c   : > { %3437 = vmatpush3.bf16.msra.mxu1 %v647_v12  ;;  %580 = vmatprep.mubr.bf16.mxu0 %v4242_v1  ;;  %vm1184_vm14 = vsmask.f32 7440  ;;  %s4976_s24 = scalar_select %p751_p12, 1, 0 }
 0x11d   : > { %3466 = vmatprep.subr.bf16.mxu1 %v3844_v28  ;;  %vm4882_vm1 = vmor %vm1183_vm13, %vm1184_vm14  ;;  %s3123_s8 = sshll.u32 %s4680_s20, 6  ;;  %s3305_s21 = sshll.u32 %s5351_s7, 3 }
 0x11e   : > { %3447 = vmatpush3.bf16.msra.mxu0 %v3843_v27  ;;  %s426_s9 = scalar_lea.vmem [#allocation12], %s3123_s8  ;;  %s5363_s25 = sld [smem:[#allocation38_spill]] }
 0x11f   : > { %3439 = vmatmul.mubr.msk.bf16.vlgmr.msra.gmra.mrb[4].mxu1 %vm508_vm2, %v3840_v19  ;;  %3448 = vmatprep.subr.bf16.mxu0 %v3845_v34  ;;  %s3282_s23 = sshll.u32 %s5362_s1, 5  ;;  %s2931_s3 = sshll.u32 %s426_s9, 4  ;;  %s5161_s3 = int_to_ptr.vmem [resolvable:$true] %s2931_s3 }
 0x120   : > { %3467 = vmatpush3.bf16.msra.mxu1 %v3844_v28  ;;  %s2928_s13 = sadd.s32 %s3305_s21, %s3282_s23  ;;  %s2915_s17 = scalar_lea.sflag [#allocation5], %s4680_s20 }
 0x121   : > { %3468 = vmatprep.subr.bf16.mxu1 %v3846_v39  ;;  %s3283_s15 = sshll.u32 %s2928_s13, 7  ;;  %s4071_s7 = scalar_lea.vmem %s5161_s3, 1024 }
 0x122   : > { %3449 = vmatpush3.bf16.msra.mxu0 %v3845_v34  ;;  %p4072_p8 = scmp.ne.s32.totalorder %s5161_s3, %s4071_s7  ;;  %p5365_p0 = scmp.ne.s32.totalorder %s5314_s16, 0 }
 0x123   : > { %3137 = vmatmul.mubr.msk.bf16.gmra.mrb[8].mxu0 %vm508_vm2, %v3838_v20  ;;  %3450 = vmatprep.subr.bf16.mxu0 %v3847_v41  ;;  %s4243_s18 = smov [#allocation12]  }
 0x124   : > { %590 = vmatprep.mubr.bf16.mxu0 %v4242_v1  ;;  %3469 = vmatpush3.bf16.msra.mxu1 %v3846_v39  ;;  %v775_v1 = vld [vmem:[#allocation2 + $0x3c] sm:$0x1]  ;;  %s5364_s12 = smov %s5363_s25  ;;  %s5166_s11 = scalar_lea.hbm %s5363_s25, %s3283_s15 }
 0x125   : > { %3470 = vmatprep.subr.bf16.mxu1 %v3848_v42  ;;  %v776_v2 = vsel %vm4742_vm5, 0, %v775_v1  ;;  %p4073_p13 = pnand %p4072_p8, %p5365_p0  ;;  %s4075_s22 = sshll.u32 %s4243_s18, 4  ;;  %s4076_s22 = int_to_ptr.vmem [resolvable:$false] %s4075_s22 }
 0x126   : > { %3451 = vmatpush3.bf16.msra.mxu0 %v3847_v41  ;;  %777 = vst [vmem:[#allocation2 + $0x3c] sm:$0x1] %v776_v2  ;;  %s4077_s5 = scalar_lea.vmem %s4076_s22, 2048  ;;  %p4078_p2 = scmp.lt.s32.totalorder %s5161_s3, %s4076_s22 }
 0x127   : > { %3452 = vmatprep.subr.bf16.mxu0 %v3849_v43  ;;  %p4074_p1 = pneg %p4073_p13  ;;  %p4079_p5 = scmp.lt.s32.totalorder %s4077_s5, %s4071_s7 }
 0x128   : > { %3471 = vmatpush3.bf16.msra.mxu1 %v3848_v42 }
 0x129   : > { %3472 = vmatprep.subr.bf16.mxu1 %v3850_v44  ;;  %p4080_p6 = por %p4079_p5, %p4078_p2 }
 0x12a   : > { %3453 = vmatpush3.bf16.msra.mxu0 %v3849_v43 }
 0x12b   : > { %3138 = vmatmul.mubr.msk.bf16.gmra.mrb[12].mxu0 %vm508_vm2, %v3839_v21  ;;  %3454 = vmatprep.subr.bf16.mxu0 %v3851_v46  ;;  %vm4899_vm2 = vmor %vm1452_vm15, %vm1453_vm0  ;;  %p4081_p9 = pnand %p4080_p6, %p4074_p1 }
 0x12c   : > { %3473 = vmatpush3.bf16.msra.mxu1 %v3850_v44  ;;  %v974_v44 = vld [vmem:[#allocation2 + $0xc] sm:$0xf] }
 0x12d   : > { %3474 = vmatprep.subr.bf16.mxu1 %v3852_v48 }
 0x12e   : > { %3455 = vmatpush3.bf16.msra.mxu0 %v3851_v46 }
 0x12f   : > { %3456 = vmatprep.subr.bf16.mxu0 %v3853_v51 }
 0x130   : > { %3475 = vmatpush3.bf16.msra.mxu1 %v3852_v48 }
 0x131   : > { %3476 = vmatprep.subr.bf16.mxu1 %v3854_v53 }
 0x132   : > { %3457 = vmatpush3.bf16.msra.mxu0 %v3853_v51 }
 0x133   : > { %3490 = vmatprep.subr.bf16.mxu0 %v4765_v55 }
 0x134   : > { %3477 = vmatpush3.bf16.msra.mxu1 %v3854_v53 }
 0x135   : > { %3478 = vmatprep.subr.bf16.mxu1 %v3858_v58 }
 0x138   : > { %3479 = vmatpush3.bf16.msra.mxu1 %v3858_v58 }
 0x139   : > { %3480 = vmatprep.subr.bf16.mxu1 %v3860_v59 }
 0x13c   : > { %3481 = vmatpush3.bf16.msra.mxu1 %v3860_v59 }
 0x13d   : > { %3514 = vmatprep.subr.bf16.mxu1 %v4770_v60 }
 0x1e6   : > { %v683_v9 = vpop.f32.mrb[0].mxu1  ;;  %v562_v11 = vpop.f32.mrb[0].mxu0 }
 0x1e7   : > { %v684_v10 = vadd.f32 %v4786_v6, %v683_v9  ;;  %v3430_v12 = vpop.f32.mrb[1].mxu1  ;;  %v563_v14 = vadd.f32 %v562_v11, %v4789_v7  ;;  %v564_v15 = vpop.f32.mrb[1].mxu0 }
 0x1e8   : > { %v686_v16 = vpop.f32.mrb[2].mxu1  ;;  %v4798_v18 = vadd.f32 %v564_v15, %v4739_v26  ;;  %v566_v20 = vpop.f32.mrb[2].mxu0 }
 0x1e9   : > { %v690_v17 = vmax.f32 %v684_v10, 0.0  ;;  %v687_v19 = vadd.f32 %v4786_v6, %v686_v16  ;;  %v3431_v21 = vpop.f32.mrb[3].mxu1  ;;  %v601_v22 = vmax.f32 %v563_v14, 0.0  ;;  %v567_v23 = vadd.f32 %v566_v20, %v4789_v7  ;;  %v568_v24 = vpop.f32.mrb[3].mxu0 }
 0x1ea   : > { %v4805_v28 = vadd.f32 %v568_v24, %v4739_v26 }
 0x1eb   : > { %v749_v25 = vsel %vm4792_vm8, 0.0, %v690_v17  ;;  %v691_v27 = vmax.f32 %v687_v19, 0.0  ;;  %v3297_v31 = vpack.c.bf16 %v601_v22, %v601_v22  ;;  %v602_v32 = vmax.f32 %v567_v23, 0.0 }
 0x1ec   : > { %v3293_v30 = vpack.c.bf16 %v749_v25, %v749_v25 }
 0x1ed   : > { %v750_v33 = vsel %vm4792_vm8, 0.0, %v691_v27  ;;  %v894_v35 = vshrl.u32 %v3297_v31, 16  ;;  %v897_v36 = vshll.u32 %v3297_v31, 16  ;;  %v3298_v39 = vpack.c.bf16 %v602_v32, %v602_v32 }
 0x1ee   : > { %v807_v34 = vshrl.u32 %v3293_v30, 16  ;;  %v3294_v38 = vpack.c.bf16 %v750_v33, %v750_v33  ;;  %v572_v40 = vpop.f32.mrb[4].mxu0  ;;  %v810_v42 = vshll.u32 %v3293_v30, 16 }
 0x1ef   : > { %v896_v43 = vrot.slane %v894_v35, 7  ;;  %v573_v45 = vadd.f32 %v572_v40, %v4789_v7  ;;  %v574_v46 = vpop.f32.mrb[5].mxu0  ;;  %v902_v50 = vshrl.u32 %v3298_v39, 16  ;;  %v905_v51 = vshll.u32 %v3298_v39, 16 }
 0x1f0   : > { %v809_v41 = vrot.slane %v807_v34, 7  ;;  %v815_v48 = vshrl.u32 %v3294_v38, 16  ;;  %v818_v49 = vshll.u32 %v3294_v38, 16  ;;  %v576_v52 = vpop.f32.mrb[6].mxu0  ;;  %v4816_v0 = vadd.f32 %v574_v46, %v4739_v26 }
 0x1f1   : > { %v899_v56 = vor.u32 %v897_v36, %v896_v43  ;;  %v900_v57 = vrot.slane %v896_v43, 4  ;;  %v578_v58 = vpop.f32.mrb[7].mxu0  ;;  %v904_v62 = vrot.slane %v902_v50, 7  ;;  %v603_v63 = vmax.f32 %v573_v45, 0.0 }
 0x1f2   : > { %v812_v53 = vor.u32 %v810_v42, %v809_v41  ;;  %v813_v54 = vrot.slane %v809_v41, 4  ;;  %v736_v59 = vpop.f32.mrb[4].mxu1  ;;  %v817_v61 = vrot.slane %v815_v48, 7  ;;  %v577_v9 = vadd.f32 %v576_v52, %v4789_v7  ;;  %v981_v41 = vld [vmem:[#allocation2 + $0x18] sm:$0xf] }
 0x1f3   : > { %v3440_v1 = vpop.f32.mrb[5].mxu1  ;;  %v975_v3 = vsel %vm4811_vm11, %v899_v56, %v974_v44  ;;  %v4830_v10 = vadd.f32 %v578_v58, %v4739_v26  ;;  %v907_v14 = vor.u32 %v905_v51, %v904_v62  ;;  %v909_v15 = vrot.slane %v904_v62, 4  ;;  %v985_v42 = vld [vmem:[#allocation2 + $0x20] sm:$0x1]  ;;  %v3859_v56 = vld [vmem:[#allocation11 + $0x88] sm:$0xff]  }
 0x1f4   : > { %v829_v2 = vsel %vm4811_vm11, %v812_v53, %v828_v37  ;;  %v739_v11 = vpop.f32.mrb[6].mxu1  ;;  %976 = vst [vmem:[#allocation2 + $0xc] sm:$0xf] %v975_v3  ;;  %v820_v12 = vor.u32 %v818_v49, %v817_v61  ;;  %v822_v13 = vrot.slane %v817_v61, 4  ;;  %v3299_v17 = vpack.c.bf16 %v603_v63, %v603_v63 }
 0x1f5   : > { %830 = vst [vmem:[#allocation2] sm:$0xf] %v829_v2  ;;  %v3441_v16 = vpop.f32.mrb[7].mxu1  ;;  %v604_v19 = vmax.f32 %v577_v9, 0.0  ;;  %v4833_v20 = vadd.f32 %v4786_v6, %v736_v59  ;;  %v4836_v21 = vadd.f32 %v4786_v6, %v739_v11  ;;  %v908_v24 = vsel %vm4824_vm12, %v900_v57, %v907_v14  ;;  %v988_v59 = vld [vmem:[#allocation2 + $0x24] sm:$0xf] }
 0x1f6   : > { %v821_v22 = vsel %vm4824_vm12, %v813_v54, %v820_v12  ;;  %v833_v23 = vsel %vm4742_vm5, %v822_v13, %v832_v5  ;;  %v979_v25 = vsel %vm4742_vm5, %v909_v15, %v978_v8  ;;  %v582_v27 = vpop.f32.mrb[8].mxu0  ;;  %977 = vst [vmem:[#allocation2 + $0x10] sm:$0xf] %v908_v24  ;;  %v911_v30 = vshrl.u32 %v3299_v17, 16 }
 0x1f7   : > { %831 = vst [vmem:[#allocation2 + $0x4] sm:$0xf] %v821_v22  ;;  %834 = vst [vmem:[#allocation2 + $0x8] sm:$0x1] %v833_v23  ;;  %v914_v6 = vshll.u32 %v3299_v17, 16  ;;  %v3300_v31 = vpack.c.bf16 %v604_v19, %v604_v19  ;;  %v583_v32 = vadd.f32 %v582_v27, %v4789_v7  ;;  %v584_v33 = vpop.f32.mrb[9].mxu0 }
 0x1f8   : > { %980 = vst [vmem:[#allocation2 + $0x14] sm:$0x1] %v979_v25  ;;  %v4848_v34 = vadd.f32 %v584_v33, %v4739_v26  ;;  %v586_v35 = vpop.f32.mrb[10].mxu0  ;;  %v913_v36 = vrot.slane %v911_v30, 7  ;;  %v992_v17 = vld [vmem:[#allocation2 + $0x2c] sm:$0x1] }
 0x1f9   : > { %v919_v37 = vshrl.u32 %v3300_v31, 16  ;;  %v922_v38 = vshll.u32 %v3300_v31, 16  ;;  %v605_v39 = vmax.f32 %v583_v32, 0.0  ;;  %v588_v40 = vpop.f32.mrb[11].mxu0  ;;  %v587_v43 = vadd.f32 %v586_v35, %v4789_v7  ;;  %v3861_v27 = vld [vmem:[#allocation11 + $0x90] sm:$0xff]  }
 0x1fa   : > { %v4852_v44 = vadd.f32 %v588_v40, %v4739_v26  ;;  %v916_v45 = vor.u32 %v914_v6, %v913_v36  ;;  %v917_v46 = vrot.slane %v913_v36, 4 }
 0x1fb   : > { %v921_v48 = vrot.slane %v919_v37, 7  ;;  %v3301_v49 = vpack.c.bf16 %v605_v39, %v605_v39  ;;  %v606_v50 = vmax.f32 %v587_v43, 0.0  ;;  %v1174_v14 = vld [vmem:[#allocation2 + $0xc] sm:$0xf] }
 0x1fc   : > { %v982_v51 = vsel %vm4811_vm11, %v916_v45, %v981_v41  ;;  %v1171_v57 = vld [vmem:[#allocation2] sm:$0xf]  ;;  %v1211_v37 = vshrl.u32 %v1174_v14, 16 }
 0x1fd   : > { %v924_v52 = vor.u32 %v922_v38, %v921_v48  ;;  %v926_v53 = vrot.slane %v921_v48, 4  ;;  %v928_v54 = vshrl.u32 %v3301_v49, 16  ;;  %983 = vst [vmem:[#allocation2 + $0x18] sm:$0xf] %v982_v51  ;;  %v931_v58 = vshll.u32 %v3301_v49, 16  ;;  %v3857_v3 = vld [vmem:[#allocation2 + $0xc] sm:$0xff]  }
 0x1fe   : > { %v3302_v61 = vpack.c.bf16 %v606_v50, %v606_v50  ;;  %v3855_v62 = vld [vmem:[#allocation2] sm:$0xff]   ;;  %v4862_v8 = vld [vmem:[#allocation2 + $0x8] sm:$0x1]  ;;  %v1187_v12 = vshrl.u32 %v1171_v57, 16  ;;  %v1190_v13 = vshll.u32 %v1171_v57, 16  ;;  %v4868_v24 = vpop.f32.mrb[12].mxu0 }
 0x1ff   : > { %v925_v63 = vsel %vm4824_vm12, %v917_v46, %v924_v52  ;;  %v986_v1 = vsel %vm4742_vm5, %v926_v53, %v985_v42  ;;  %v930_v2 = vrot.slane %v928_v54, 7  ;;  %v4860_v5 = vld [vmem:[#allocation2 + $0x4] sm:$0xf]  ;;  %3458 = vmatprep.mubr.bf16.mxu0 %v3855_v62  ;;  %v4866_v23 = vld [vmem:[#allocation2 + $0x10] sm:$0xf]  ;;  %v1206_v31 = vshll.u32 %v4862_v8, 16 }
 0x200   : > { %984 = vst [vmem:[#allocation2 + $0x1c] sm:$0xf] %v925_v63  ;;  %987 = vst [vmem:[#allocation2 + $0x20] sm:$0x1] %v986_v1  ;;  %v936_v9 = vshrl.u32 %v3302_v61, 16  ;;  %v939_v11 = vshll.u32 %v3302_v61, 16  ;;  %3459 = vmatmul.mubr.bf16.vlgmr.msra.gmra.mrb[16].mxu0 %v3857_v3 }
 0x201   : > { %v933_v15 = vor.u32 %v931_v58, %v930_v2  ;;  %v934_v16 = vrot.slane %v930_v2, 4  ;;  %v1196_v19 = vshll.u32 %v4860_v5, 16  ;;  %v1200_v22 = vshrl.u32 %v4860_v5, 16  ;;  %3491 = vmatpush3.bf16.msra.mxu0 %v4765_v55  ;;  %v4872_v32 = vpop.f32.mrb[13].mxu0  ;;  %v4878_v42 = vld [vmem:[#allocation2 + $0x14] sm:$0x1] }
 0x202   : > { %v938_v25 = vrot.slane %v936_v9, 7  ;;  %v1189_v30 = vrot.slane %v1187_v12, 4  ;;  %v1192_v6 = vrot.slane %v1190_v13, 5  ;;  %3492 = vmatprep.subr.bf16.mxu0 %v3859_v56  ;;  %v4876_v38 = vpop.f32.mrb[14].mxu0  ;;  %v1208_v41 = vrot.slane %v1206_v31, 5  ;;  %v3863_v58 = vld [vmem:[#allocation11 + $0x98] sm:$0xff]  }
 0x203   : > { %v989_v33 = vsel %vm4811_vm11, %v933_v15, %v988_v59  ;;  %v1198_v35 = vrot.slane %v1196_v19, 5  ;;  %v1202_v36 = vrot.slane %v1200_v22, 4  ;;  %v1436_v43 = vld [vmem:[#allocation2] sm:$0xe]  ;;  %v1213_v48 = vrot.slane %v1211_v37, 4  ;;  %v4887_v51 = vpop.f32.mrb[15].mxu0 }
 0x204   : > { %990 = vst [vmem:[#allocation2 + $0x24] sm:$0xf] %v989_v33  ;;  %v941_v39 = vor.u32 %v939_v11, %v938_v25  ;;  %v943_v40 = vrot.slane %v938_v25, 4  ;;  %v1193_v55 = vor.u32 %v1192_v6, %v1189_v30  ;;  %v1214_v49 = vshll.u32 %v1174_v14, 16  ;;  %v1177_v59 = vld [vmem:[#allocation2 + $0x18] sm:$0xf] }
 0x205   : > { %v1203_v46 = vor.u32 %v1202_v36, %v1198_v35  ;;  %v1220_v50 = vshll.u32 %v4866_v23, 16  ;;  %3493 = vmatpush3.bf16.msra.mxu0 %v3859_v56  ;;  %v1224_v57 = vshrl.u32 %v4866_v23, 16  ;;  %v1230_v1 = vshll.u32 %v4878_v42, 16  ;;  %v3867_v31 = vld [vmem:[#allocation11 + $0xa0] sm:$0xff]  }
 0x206   : > { %v942_v52 = vsel %vm4824_vm12, %v934_v16, %v941_v39  ;;  %v993_v53 = vsel %vm4742_vm5, %v943_v40, %v992_v17  ;;  %v1194_v54 = vrot.slane %v1193_v55, 4  ;;  %3494 = vmatprep.subr.bf16.mxu0 %v3861_v27  ;;  %v1216_v62 = vrot.slane %v1214_v49, 5 }
 0x207   : > { %991 = vst [vmem:[#allocation2 + $0x28] sm:$0xf] %v942_v52  ;;  %994 = vst [vmem:[#allocation2 + $0x2c] sm:$0x1] %v993_v53  ;;  %v1204_v61 = vrot.slane %v1203_v46, 4  ;;  %v1222_v63 = vrot.slane %v1220_v50, 5 }
 0x208   : > { %v1199_v2 = vsel %vm4882_vm1, %v1194_v54, %v1198_v35  ;;  %v1226_v3 = vrot.slane %v1224_v57, 4  ;;  %v3864_v9 = vld [vmem:[#allocation2 + $0x18] sm:$0xff]   ;;  %v3183_v11 = vrot.slane %v1436_v43, 9  ;;  %v1217_v13 = vor.u32 %v1216_v62, %v1213_v48  ;;  %v4909_v25 = vld [vmem:[#allocation2 + $0x20] sm:$0x1] }
 0x209   : > { %v1209_v12 = vsel %vm4882_vm1, %v1204_v61, %v1208_v41  ;;  %v1232_v14 = vrot.slane %v1230_v1, 5  ;;  %v1457_v15 = vrot.slane %v4860_v5, 5  ;;  %v4906_v16 = vld [vmem:[#allocation2 + $0x1c] sm:$0xf]  ;;  %3495 = vmatpush3.bf16.msra.mxu0 %v3861_v27  ;;  %3462 = vmatprep.mubr.bf16.mxu0 %v3864_v9  ;;  %v1460_v22 = vrot.slane %v4862_v8, 5 }
 0x20a   : > { %v3171_v17 = vcombine.low %v1199_v2, %v1209_v12  ;;  %v1227_v19 = vor.u32 %v1226_v3, %v1222_v63  ;;  %v1235_v30 = vshrl.u32 %v1177_v59, 16  ;;  %v1218_v6 = vrot.slane %v1217_v13, 4  ;;  %3496 = vmatprep.subr.bf16.mxu0 %v3863_v58  ;;  %v3865_v54 = vld [vmem:[#allocation11 + $0xc8] sm:$0xff]  }
 0x20b   : > { %v1458_v33 = vsel %vm4899_vm2, %v3183_v11, %v1457_v15  ;;  %v1459_v35 = vrot.slane %v1457_v15, 4  ;;  %v1238_v36 = vshll.u32 %v1177_v59, 16  ;;  %v1244_v27 = vshll.u32 %v4906_v16, 16  ;;  %v1180_v43 = vld [vmem:[#allocation2 + $0x24] sm:$0xf]  ;;  %v3869_v61 = vld [vmem:[#allocation11 + $0xa8] sm:$0xff]  }
 0x20c   : > { %3482 = vmatprep.mubr.bf16.mxu1 %v3171_v17  ;;  %v1228_v5 = vrot.slane %v1227_v19, 4  ;;  %v1237_v37 = vrot.slane %v1235_v30, 4  ;;  %v1248_v39 = vshrl.u32 %v4906_v16, 16  ;;  %v1223_v8 = vsel %vm4882_vm1, %v1218_v6, %v1222_v63 }
 0x20d   : > { %v1461_v40 = vsel %vm4899_vm2, %v1459_v35, %v1460_v22  ;;  %v1240_v55 = vrot.slane %v1238_v36, 5  ;;  %v1254_v41 = vshll.u32 %v4909_v25, 16  ;;  %3497 = vmatpush3.bf16.msra.mxu0 %v3863_v58  ;;  %v1246_v50 = vrot.slane %v1244_v27, 5 }
 0x20e   : > { %v1233_v46 = vsel %vm4882_vm1, %v1228_v5, %v1232_v14  ;;  %v3866_v48 = vld [vmem:[#allocation2 + $0x24] sm:$0xff]   ;;  %v3187_v49 = vcombine.low %v1458_v33, %v1461_v40  ;;  %v1250_v52 = vrot.slane %v1248_v39, 4  ;;  %3498 = vmatprep.subr.bf16.mxu0 %v3867_v31  ;;  %v593_v62 = vadd.f32 %v4868_v24, %v4789_v7  ;;  %v4932_v3 = vld [vmem:[#allocation2 + $0x2c] sm:$0x1] }
 0x20f   : > { %v3172_v53 = vcombine.low %v1223_v8, %v1233_v46  ;;  %v1241_v57 = vor.u32 %v1240_v55, %v1237_v37  ;;  %v1256_v59 = vrot.slane %v1254_v41, 5  ;;  %v4924_v63 = vld [vmem:[#allocation2 + $0x28] sm:$0xf]  ;;  %3463 = vmatmul.mubr.bf16.gmra.mrb[20].mxu0 %v3866_v48  ;;  %v4928_v58 = vadd.f32 %v4872_v32, %v4739_v26  ;;  %v3871_v33 = vld [vmem:[#allocation11 + $0xb0] sm:$0xff]   ;;  %v995_v8 = vld [vmem:[#allocation2 + $0x30] sm:$0xf] }
 0x210   : > { %v1251_v1 = vor.u32 %v1250_v52, %v1246_v50  ;;  %v597_v2 = vadd.f32 %v4876_v38, %v4789_v7  ;;  %v1259_v9 = vshrl.u32 %v1180_v43, 16  ;;  %3506 = vmatprep.mubr.bf16.mxu0 %v3187_v49  ;;  %v607_v12 = vmax.f32 %v593_v62, 0.0  ;;  %v3868_v7 = vld [vmem:[#allocation11 + $0xd0] sm:$0xff]   ;;  %v3870_v39 = vld [vmem:[#allocation11 + $0xd8] sm:$0xff]   ;;  %v1438_v48 = vld [vmem:[#allocation2 + $0x18] sm:$0xe] }
 0x211   : > { %3483 = vmatmul.mubr.bf16.vlgmr.msra.gmra.mrb[8].mxu1 %v3172_v53  ;;  %v1242_v11 = vrot.slane %v1241_v57, 4  ;;  %v1262_v13 = vshll.u32 %v1180_v43, 16  ;;  %v1268_v24 = vshll.u32 %v4924_v63, 16  ;;  %3499 = vmatpush3.bf16.msra.mxu0 %v3867_v31  ;;  %v1272_v17 = vshrl.u32 %v4924_v63, 16  ;;  %v1437_v46 = vld [vmem:[#allocation2 + $0xc] sm:$0xe] }
 0x212   : > { %3515 = vmatpush3.bf16.msra.mxu1 %v4770_v60  ;;  %v1252_v14 = vrot.slane %v1251_v1, 4  ;;  %v608_v15 = vmax.f32 %v597_v2, 0.0  ;;  %v1261_v32 = vrot.slane %v1259_v9, 4  ;;  %3500 = vmatprep.subr.bf16.mxu0 %v3869_v61  ;;  %v3303_v19 = vpack.c.bf16 %v607_v12, %v607_v12  ;;  %v3874_v52 = vld [vmem:[#allocation11 + $0xb8] sm:$0xff]   ;;  %v999_v2 = vld [vmem:[#allocation2 + $0x38] sm:$0x1] }
 0x213   : > { %3516 = vmatprep.subr.bf16.mxu1 %v3865_v54  ;;  %v1247_v38 = vsel %vm4882_vm1, %v1242_v11, %v1246_v50  ;;  %v1264_v22 = vrot.slane %v1262_v13, 5  ;;  %v1270_v30 = vrot.slane %v1268_v24, 5  ;;  %v1274_v31 = vrot.slane %v1272_v17, 4  ;;  %v3872_v11 = vld [vmem:[#allocation11 + $0xe0] sm:$0xff]  }
 0x214   : > { %v1257_v6 = vsel %vm4882_vm1, %v1252_v14, %v1256_v59  ;;  %v3304_v60 = vpack.c.bf16 %v608_v15, %v608_v15  ;;  %v1278_v35 = vshll.u32 %v4932_v3, 16  ;;  %v945_v5 = vshrl.u32 %v3303_v19, 16  ;;  %v1807_v14 = vld [vmem:[#allocation2 + $0xc] sm:$0xf]  ;;  %v4949_v15 = vld [vmem:[#allocation2 + $0x10] sm:$0xf] }
 0x215   : > { %v3173_v36 = vcombine.low %v1247_v38, %v1257_v6  ;;  %v948_v37 = vshll.u32 %v3303_v19, 16  ;;  %v1265_v27 = vor.u32 %v1264_v22, %v1261_v32  ;;  %3501 = vmatpush3.bf16.msra.mxu0 %v3869_v61  ;;  %v1275_v41 = vor.u32 %v1274_v31, %v1270_v30  ;;  %v3873_v22 = vld [vmem:[#allocation2 + $0xc] sm:$0xff]  }
 0x216   : > { %3517 = vmatpush3.bf16.msra.mxu1 %v3865_v54  ;;  %v953_v40 = vshrl.u32 %v3304_v60, 16  ;;  %v956_v55 = vshll.u32 %v3304_v60, 16  ;;  %v1280_v43 = vrot.slane %v1278_v35, 5  ;;  %v947_v49 = vrot.slane %v945_v5, 7  ;;  %3502 = vmatprep.subr.bf16.mxu0 %v3871_v33  ;;  %v3876_v6 = vld [vmem:[#allocation11 + $0x100] sm:$0xff]  }
 0x217   : > { %3518 = vmatprep.subr.bf16.mxu1 %v3868_v7  ;;  %3486 = vmatprep.mubr.bf16.mxu1 %v3173_v36  ;;  %v1266_v50 = vrot.slane %v1265_v27, 4  ;;  %v1464_v53 = vrot.slane %v4866_v23, 5  ;;  %v1467_v57 = vrot.slane %v4878_v42, 5  ;;  %v1276_v59 = vrot.slane %v1275_v41, 4  ;;  %v1439_v60 = vld [vmem:[#allocation2 + $0x24] sm:$0xe] }
 0x218   : > { %v955_v54 = vrot.slane %v953_v40, 7  ;;  %v1471_v61 = vrot.slane %v4906_v16, 5  ;;  %v950_v62 = vor.u32 %v948_v37, %v947_v49  ;;  %v951_v1 = vrot.slane %v947_v49, 4  ;;  %v4967_v37 = vld [vmem:[#allocation2 + $0x14] sm:$0x1]  ;;  %v3875_v40 = vld [vmem:[#allocation11 + $0xe8] sm:$0xff]  }
 0x219   : > { %v1271_v9 = vsel %vm4882_vm1, %v1266_v50, %v1270_v30  ;;  %v3185_v12 = vrot.slane %v1438_v48, 9  ;;  %v1281_v23 = vsel %vm4882_vm1, %v1276_v59, %v1280_v43  ;;  %3503 = vmatpush3.bf16.msra.mxu0 %v3871_v33  ;;  %v1466_v42 = vrot.slane %v1464_v53, 4  ;;  %v3878_v50 = vld [vmem:[#allocation11 + $0x108] sm:$0xff]   ;;  %v3877_v59 = vld [vmem:[#allocation11 + $0xf0] sm:$0xff]  }
 0x21a   : > { %3519 = vmatpush3.bf16.msra.mxu1 %v3868_v7  ;;  %v958_v13 = vor.u32 %v956_v55, %v955_v54  ;;  %v960_v24 = vrot.slane %v955_v54, 4  ;;  %v996_v16 = vsel %vm4811_vm11, %v950_v62, %v995_v8  ;;  %v3174_v32 = vcombine.low %v1271_v9, %v1281_v23  ;;  %3504 = vmatprep.subr.bf16.mxu0 %v3874_v52  ;;  %v3880_v9 = vld [vmem:[#allocation11 + $0x110] sm:$0xff]   ;;  %v3879_v23 = vld [vmem:[#allocation11 + $0xf8] sm:$0xff]  }
 0x21b   : > { %3520 = vmatprep.subr.bf16.mxu1 %v3870_v39  ;;  %v3184_v17 = vrot.slane %v1437_v46, 9  ;;  %v1473_v38 = vrot.slane %v1471_v61, 4  ;;  %997 = vst [vmem:[#allocation2 + $0x30] sm:$0xf] %v996_v16  ;;  %v1468_v30 = vsel %vm4899_vm2, %v1466_v42, %v1467_v57  ;;  %v1474_v33 = vrot.slane %v4909_v25, 5 }
 0x21c   : > { %v959_v7 = vsel %vm4824_vm12, %v951_v1, %v958_v13  ;;  %v1000_v19 = vsel %vm4742_vm5, %v960_v24, %v999_v2  ;;  %3487 = vmatmul.mubr.bf16.gmra.mrb[12].mxu1 %v3174_v32  ;;  %v1472_v35 = vsel %vm4899_vm2, %v3185_v12, %v1471_v61  ;;  %v1478_v36 = vrot.slane %v4924_v63, 5 }
 0x21d   : > { %998 = vst [vmem:[#allocation2 + $0x34] sm:$0xf] %v959_v7  ;;  %1001 = vst [vmem:[#allocation2 + $0x38] sm:$0x1] %v1000_v19  ;;  %v1465_v31 = vsel %vm4899_vm2, %v3184_v17, %v1464_v53  ;;  %3530 = vmatprep.mubr.bf16.mxu1 %v3873_v22  ;;  %v1475_v5 = vsel %vm4899_vm2, %v1473_v38, %v1474_v33  ;;  %v1820_v25 = vshrl.u32 %v1807_v14, 16  ;;  %v1823_v27 = vshll.u32 %v1807_v14, 16 }
 0x21e   : > { %3521 = vmatpush3.bf16.msra.mxu1 %v3870_v39  ;;  %v1829_v8 = vshll.u32 %v4949_v15, 16  ;;  %3505 = vmatpush3.bf16.msra.mxu0 %v3874_v52  ;;  %v3188_v55 = vcombine.low %v1465_v31, %v1468_v30  ;;  %v3186_v41 = vrot.slane %v1439_v60, 9  ;;  %v1833_v63 = vshrl.u32 %v4949_v15, 16  ;;  %v3884_v14 = vld [vmem:[#allocation11 + $0x118] sm:$0xff]   ;;  %v1810_v7 = vld [vmem:[#allocation2 + $0x18] sm:$0xf] }
 0x21f   : > { %3522 = vmatprep.subr.bf16.mxu1 %v3872_v11  ;;  %3538 = vmatprep.subr.bf16.mxu0 %v3876_v6  ;;  %v1481_v39 = vrot.slane %v4932_v3, 5  ;;  %v1822_v43 = vrot.slane %v1820_v25, 4  ;;  %v1825_v46 = vrot.slane %v1823_v27, 5  ;;  %v3189_v49 = vcombine.low %v1472_v35, %v1475_v5  ;;  %v4994_v19 = vld [vmem:[#allocation2 + $0x1c] sm:$0xf]  ;;  %v3882_v22 = vld [vmem:[#allocation11 + $0x140] sm:$0xff]  }
 0x220   : > { %v1831_v48 = vrot.slane %v1829_v8, 5  ;;  %v1480_v53 = vrot.slane %v1478_v36, 4  ;;  %v1835_v57 = vrot.slane %v1833_v63, 4  ;;  %v1839_v54 = vshll.u32 %v4967_v37, 16  ;;  %v4997_v33 = vld [vmem:[#allocation2 + $0x28] sm:$0xf] }
 0x221   : > { %3507 = vmatmul.mubr.bf16.vlgmr.msra.gmra.mrb[24].mxu0 %v3188_v55  ;;  %v1826_v52 = vor.u32 %v1825_v46, %v1822_v43  ;;  %v4980_v61 = vadd.f32 %v4887_v51, %v4739_v26  ;;  %v1479_v62 = vsel %vm4899_vm2, %v3186_v41, %v1478_v36  ;;  %v2087_v13 = vrot.slane %v4949_v15, 5  ;;  %v2069_v15 = vld [vmem:[#allocation2 + $0xc] sm:$0xe]  ;;  %v3886_v35 = vld [vmem:[#allocation11 + $0x120] sm:$0xff]   ;;  %v3881_v41 = vld [vmem:[#allocation2 + $0x18] sm:$0xff]  }
 0x222   : > { %3523 = vmatpush3.bf16.msra.mxu1 %v3872_v11  ;;  %3510 = vmatprep.mubr.bf16.mxu0 %v3189_v49  ;;  %v1836_v3 = vor.u32 %v1835_v57, %v1831_v48  ;;  %v1482_v2 = vsel %vm4899_vm2, %v1480_v53, %v1481_v39  ;;  %v1841_v12 = vrot.slane %v1839_v54, 5  ;;  %v753_v24 = vstv %s4976_s24  ;;  %v3885_v63 = vld [vmem:[#allocation11 + $0x148] sm:$0xff]   ;;  %v1816_v53 = vld [vmem:[#allocation2 + $0x30] sm:$0xf] }
 0x223   : > { %3524 = vmatprep.subr.bf16.mxu1 %v3875_v40  ;;  %3539 = vmatpush3.bf16.msra.mxu0 %v3876_v6  ;;  %v1827_v1 = vrot.slane %v1826_v52, 4  ;;  %v3190_v51 = vcombine.low %v1479_v62, %v1482_v2  ;;  %v743_v16 = vmax.f32 %v4833_v20, 0.0  ;;  %v744_v32 = vmax.f32 %v4836_v21, 0.0  ;;  %v1813_v6 = vld [vmem:[#allocation2 + $0x24] sm:$0xf]  ;;  %v3889_v43 = vld [vmem:[#allocation11 + $0x128] sm:$0xff]  }
 0x224   : > { %3540 = vmatprep.subr.bf16.mxu0 %v3878_v50  ;;  %v1837_v11 = vrot.slane %v1836_v3, 4  ;;  %v2089_v38 = vrot.slane %v2087_v13, 4  ;;  %vm754_vm3 = vcmp.eq.s32.totalorder %v753_v24, 1  ;;  %v2090_v30 = vrot.slane %v4967_v37, 5  ;;  %v5017_v62 = vld [vmem:[#allocation2 + $0x34] sm:$0xf] }
 0x225   : > { %v1832_v42 = vsel %vm4882_vm1, %v1827_v1, %v1831_v48  ;;  %v3223_v20 = vrot.slane %v2069_v15, 9  ;;  %v1844_v21 = vshrl.u32 %v1810_v7, 16  ;;  %v755_v60 = vsel %vm754_vm3, 0.0, %v743_v16  ;;  %v3883_v48 = vld [vmem:[#allocation2 + $0x24] sm:$0xff]   ;;  %v5019_v1 = vld [vmem:[#allocation2 + $0x2c] sm:$0x1] }
 0x226   : > { %3525 = vmatpush3.bf16.msra.mxu1 %v3875_v40  ;;  %v1842_v26 = vsel %vm4882_vm1, %v1837_v11, %v1841_v12  ;;  %v756_v31 = vsel %vm754_vm3, 0.0, %v744_v32  ;;  %v5001_v36 = vsel %vm4899_vm2, %v2089_v38, %v2090_v30  ;;  %v1847_v5 = vshll.u32 %v1810_v7, 16  ;;  %v3891_v15 = vld [vmem:[#allocation11 + $0x130] sm:$0xff]  }
 0x227   : > { %3526 = vmatprep.subr.bf16.mxu1 %v3877_v59  ;;  %3541 = vmatpush3.bf16.msra.mxu0 %v3878_v50  ;;  %v3211_v17 = vcombine.low %v1832_v42, %v1842_v26  ;;  %v1853_v25 = vshll.u32 %v4994_v19, 16  ;;  %v1857_v27 = vshrl.u32 %v4994_v19, 16  ;;  %v1868_v37 = vshrl.u32 %v1813_v6, 16  ;;  %v5013_v50 = vld [vmem:[#allocation2 + $0x20] sm:$0x1] }
 0x228   : > { %3542 = vmatprep.subr.bf16.mxu0 %v3880_v9  ;;  %v1871_v8 = vshll.u32 %v1813_v6, 16  ;;  %v1877_v40 = vshll.u32 %v4997_v33, 16  ;;  %v1881_v55 = vshrl.u32 %v4997_v33, 16  ;;  %v5009_v39 = vsel %vm4899_vm2, %v3223_v20, %v2087_v13  ;;  %v3888_v13 = vld [vmem:[#allocation11 + $0x150] sm:$0xff]  }
 0x229   : > { %3511 = vmatmul.mubr.bf16.gmra.mrb[28].mxu0 %v3190_v51  ;;  %v3295_v46 = vpack.c.bf16 %v755_v60, %v755_v60  ;;  %v3227_v49 = vcombine.low %v5009_v39, %v5001_v36  ;;  %v3296_v57 = vpack.c.bf16 %v756_v31, %v756_v31  ;;  %v1846_v54 = vrot.slane %v1844_v21, 4  ;;  %v862_v21 = vld [vmem:[#allocation2 + $0x3c] sm:$0xf] }
 0x22a   : > { %3527 = vmatpush3.bf16.msra.mxu1 %v3877_v59  ;;  %3554 = vmatprep.mubr.bf16.mxu0 %v3211_v17  ;;  %v1849_v52 = vrot.slane %v1847_v5, 5  ;;  %v5015_v59 = vrot.slane %v1853_v25, 5  ;;  %v1859_v3 = vrot.slane %v1857_v27, 4  ;;  %v1870_v2 = vrot.slane %v1868_v37, 4  ;;  %v3887_v17 = vld [vmem:[#allocation2 + $0x30] sm:$0xff]  }
 0x22b   : > { %3528 = vmatprep.subr.bf16.mxu1 %v3879_v23  ;;  %3543 = vmatpush3.bf16.msra.mxu0 %v3880_v9  ;;  %v1873_v9 = vrot.slane %v1871_v8, 5  ;;  %v5021_v11 = vrot.slane %v1877_v40, 5  ;;  %v1883_v12 = vrot.slane %v1881_v55, 4  ;;  %v1863_v24 = vshll.u32 %v5013_v50, 16  ;;  %v866_v37 = vld [vmem:[#allocation2 + $0x44] sm:$0x1] }
 0x22c   : > { %3544 = vmatprep.subr.bf16.mxu0 %v3884_v14  ;;  %v1895_v26 = vshll.u32 %v1816_v53, 16  ;;  %v842_v51 = vshrl.u32 %v3295_v46, 16  ;;  %v1901_v42 = vshll.u32 %v5017_v62, 16  ;;  %v845_v16 = vshll.u32 %v3295_v46, 16  ;;  %v5031_v46 = vld [vmem:[#allocation2 + $0x38] sm:$0x1] }
 0x22d   : > { %v850_v32 = vshrl.u32 %v3296_v57, 16  ;;  %v1850_v38 = vor.u32 %v1849_v52, %v1846_v54  ;;  %v1860_v7 = vor.u32 %v1859_v3, %v5015_v59  ;;  %v1874_v6 = vor.u32 %v1873_v9, %v1870_v2  ;;  %v3892_v52 = vld [vmem:[#allocation11 + $0x160] sm:$0xff]  }
 0x22e   : > { %3529 = vmatpush3.bf16.msra.mxu1 %v3879_v23  ;;  %v1892_v23 = vshrl.u32 %v1816_v53, 16  ;;  %v844_v30 = vrot.slane %v842_v51, 7  ;;  %v1884_v20 = vor.u32 %v1883_v12, %v5021_v11  ;;  %v853_v31 = vshll.u32 %v3296_v57, 16 }
 0x22f   : > { %3562 = vmatprep.subr.bf16.mxu1 %v3882_v22  ;;  %3545 = vmatpush3.bf16.msra.mxu0 %v3884_v14  ;;  %v1905_v14 = vshrl.u32 %v5017_v62, 16  ;;  %v852_v60 = vrot.slane %v850_v32, 7  ;;  %v1897_v5 = vrot.slane %v1895_v26, 5  ;;  %v5029_v8 = vrot.slane %v1901_v42, 5  ;;  %v3897_v32 = vld [vmem:[#allocation11 + $0x188] sm:$0xff]  }
 0x230   : > { %3546 = vmatprep.subr.bf16.mxu0 %v3886_v35  ;;  %v1894_v36 = vrot.slane %v1892_v23, 4  ;;  %v847_v25 = vor.u32 %v845_v16, %v844_v30  ;;  %v848_v27 = vrot.slane %v844_v30, 4  ;;  %v1865_v39 = vrot.slane %v1863_v24, 5  ;;  %v3894_v24 = vld [vmem:[#allocation11 + $0x168] sm:$0xff]  }
 0x231   : > { %3531 = vmatmul.mubr.bf16.vlgmr.msra.gmra.mrb[16].mxu1 %v3881_v41  ;;  %v1907_v40 = vrot.slane %v1905_v14, 4  ;;  %v855_v55 = vor.u32 %v853_v31, %v852_v60  ;;  %v857_v41 = vrot.slane %v852_v60, 4  ;;  %v1851_v53 = vrot.slane %v1850_v38, 4  ;;  %v3896_v38 = vld [vmem:[#allocation11 + $0x170] sm:$0xff]   ;;  %v2070_v30 = vld [vmem:[#allocation2 + $0x18] sm:$0xe] }
 0x232   : > { %3534 = vmatprep.mubr.bf16.mxu1 %v3883_v48  ;;  %3563 = vmatpush3.bf16.msra.mxu1 %v3882_v22  ;;  %v1887_v22 = vshll.u32 %v5019_v1, 16  ;;  %v863_v48 = vsel %vm4811_vm11, %v847_v25, %v862_v21  ;;  %v1861_v57 = vrot.slane %v1860_v7, 4  ;;  %v1875_v3 = vrot.slane %v1874_v6, 4  ;;  %v2071_v21 = vld [vmem:[#allocation2 + $0x24] sm:$0xe] }
 0x233   : > { %3564 = vmatprep.subr.bf16.mxu1 %v3885_v63  ;;  %3547 = vmatpush3.bf16.msra.mxu0 %v3886_v35  ;;  %v3890_v35 = vld [vmem:[#allocation11 + $0x158] sm:$0xff]   ;;  %864 = vst [vmem:[#allocation2 + $0x3c] sm:$0xf] %v863_v48  ;;  %v867_v54 = vsel %vm4742_vm5, %v857_v41, %v866_v37  ;;  %v1885_v2 = vrot.slane %v1884_v20, 4  ;;  %v1898_v47 = vor.u32 %v1897_v5, %v1894_v36  ;;  %v1911_v12 = vshll.u32 %v5031_v46, 16 }
 0x234   : > { %3548 = vmatprep.subr.bf16.mxu0 %v3889_v43  ;;  %v1889_v9 = vrot.slane %v1887_v22, 5  ;;  %868 = vst [vmem:[#allocation2 + $0x44] sm:$0x1] %v867_v54  ;;  %v1856_v29 = vsel %vm4882_vm1, %v1851_v53, %v5015_v59  ;;  %v1866_v4 = vsel %vm4882_vm1, %v1861_v57, %v1865_v39  ;;  %v1880_v23 = vsel %vm4882_vm1, %v1875_v3, %v5021_v11  ;;  %v3899_v22 = vld [vmem:[#allocation11 + $0x190] sm:$0xff]   ;;  %v3898_v5 = vld [vmem:[#allocation11 + $0x178] sm:$0xff]   ;;  %v3900_v53 = vld [vmem:[#allocation2 + $0x18] sm:$0xff]  }
 0x235   : > { %v1899_v51 = vrot.slane %v1898_v47, 4  ;;  %v1913_v14 = vrot.slane %v1911_v12, 5  ;;  %v3212_v16 = vcombine.low %v1856_v29, %v1866_v4  ;;  %v2094_v6 = vrot.slane %v4994_v19, 5  ;;  %v5064_v57 = vld [vmem:[#allocation2 + $0x20] sm:$0x1]  ;;  %v3903_v29 = vld [vmem:[#allocation11 + $0x1c8] sm:$0xff]  }
 0x236   : > { %3565 = vmatpush3.bf16.msra.mxu1 %v3885_v63  ;;  %v3893_v63 = vld [vmem:[#allocation11 + $0x138] sm:$0xff]   ;;  %v1890_v26 = vsel %vm4882_vm1, %v1885_v2, %v1889_v9  ;;  %v2101_v20 = vrot.slane %v4997_v33, 5  ;;  %v2097_v37 = vrot.slane %v5013_v50, 5  ;;  %v3225_v19 = vrot.slane %v2071_v21, 9  ;;  %v3904_v2 = vld [vmem:[#allocation11 + $0x1a0] sm:$0xff]  }
 0x237   : > { %3566 = vmatprep.subr.bf16.mxu1 %v3888_v13  ;;  %3549 = vmatpush3.bf16.msra.mxu0 %v3889_v43  ;;  %v856_v43 = vsel %vm4824_vm12, %v848_v27, %v855_v55  ;;  %v3213_v59 = vcombine.low %v1880_v23, %v1890_v26  ;;  %v1904_v11 = vsel %vm4882_vm1, %v1899_v51, %v5029_v8  ;;  %v3224_v27 = vrot.slane %v2070_v30, 9  ;;  %v3902_v55 = vld [vmem:[#allocation11 + $0x198] sm:$0xff]   ;;  %v2072_v9 = vld [vmem:[#allocation2 + $0x30] sm:$0xe] }
 0x238   : > { %3550 = vmatprep.subr.bf16.mxu0 %v3891_v15  ;;  %865 = vst [vmem:[#allocation2 + $0x40] sm:$0xf] %v856_v43  ;;  %v2104_v33 = vrot.slane %v5019_v1, 5  ;;  %v3901_v43 = vld [vmem:[#allocation11 + $0x1c0] sm:$0xff]   ;;  %v2102_v1 = vsel %vm4899_vm2, %v3225_v19, %v2101_v20  ;;  %v2470_v12 = vshll.u32 %v5064_v57, 16  ;;  %v3910_v30 = vld [vmem:[#allocation11 + $0x1b8] sm:$0xff]  }
 0x239   : > { %3535 = vmatmul.mubr.bf16.gmra.mrb[20].mxu1 %v3887_v17  ;;  %v2438_v17 = vld [vmem:[#allocation2 + $0x18] sm:$0xf]  ;;  %v2095_v50 = vsel %vm4899_vm2, %v3224_v27, %v2094_v6  ;;  %v2444_v21 = vld [vmem:[#allocation2 + $0x30] sm:$0xf] }
 0x23a   : > { %3567 = vmatpush3.bf16.msra.mxu1 %v3888_v13  ;;  %3578 = vmatprep.mubr.bf16.mxu1 %v3227_v49  ;;  %v1908_v49 = vor.u32 %v1907_v40, %v5029_v8  ;;  %v3895_v13 = vld [vmem:[#allocation11 + $0x180] sm:$0xff]   ;;  %v2451_v60 = vshrl.u32 %v2438_v17, 16  ;;  %v2454_v31 = vshll.u32 %v2438_v17, 16  ;;  %v2096_v8 = vrot.slane %v2094_v6, 4  ;;  %v2441_v6 = vld [vmem:[#allocation2 + $0x24] sm:$0xf] }
 0x23b   : > { %3568 = vmatprep.subr.bf16.mxu1 %v3890_v35  ;;  %3551 = vmatpush3.bf16.msra.mxu0 %v3891_v15  ;;  %v5051_v15 = vld [vmem:[#allocation2 + $0x1c] sm:$0xf]  ;;  %v2103_v40 = vrot.slane %v2101_v20, 4  ;;  %v5085_v20 = vld [vmem:[#allocation2 + $0x28] sm:$0xf]  ;;  %v3913_v27 = vld [vmem:[#allocation11 + $0x200] sm:$0xff]  }
 0x23c   : > { %3552 = vmatprep.subr.bf16.mxu0 %v3893_v63  ;;  %v1909_v42 = vrot.slane %v1908_v49, 4  ;;  %v2464_v36 = vshrl.u32 %v5051_v15, 16  ;;  %v2453_v41 = vrot.slane %v2451_v60, 4  ;;  %v2098_v54 = vsel %vm4899_vm2, %v2096_v8, %v2097_v37  ;;  %v5087_v60 = vld [vmem:[#allocation2 + $0x34] sm:$0xf] }
 0x23d   : > { %v2105_v3 = vsel %vm4899_vm2, %v2103_v40, %v2104_v33  ;;  %v2499_v37 = vshrl.u32 %v2444_v21, 16  ;;  %v2502_v8 = vshll.u32 %v2444_v21, 16  ;;  %v2508_v19 = vshll.u32 %v5087_v60, 16  ;;  %v3911_v33 = vld [vmem:[#allocation11 + $0x1e8] sm:$0xff]   ;;  %v5115_v21 = vld [vmem:[#allocation2 + $0x44] sm:$0x1] }
 0x23e   : > { %3569 = vmatpush3.bf16.msra.mxu1 %v3890_v35  ;;  %v1914_v7 = vsel %vm4882_vm1, %v1909_v42, %v1913_v14  ;;  %v2460_v35 = vshll.u32 %v5051_v15, 16  ;;  %v2466_v48 = vrot.slane %v2464_v36, 4  ;;  %v3229_v4 = vcombine.low %v2102_v1, %v2105_v3  ;;  %v3906_v14 = vld [vmem:[#allocation11 + $0x1a8] sm:$0xff]   ;;  %v3914_v3 = vld [vmem:[#allocation2 + $0x30] sm:$0xff]  }
 0x23f   : > { %3570 = vmatprep.subr.bf16.mxu1 %v3892_v52  ;;  %3553 = vmatpush3.bf16.msra.mxu0 %v3893_v63  ;;  %v3214_v25 = vcombine.low %v1904_v11, %v1914_v7  ;;  %v2456_v63 = vrot.slane %v2454_v31, 5  ;;  %v2472_v42 = vrot.slane %v2470_v12, 5  ;;  %v3907_v7 = vld [vmem:[#allocation11 + $0x1d8] sm:$0xff]   ;;  %v3909_v31 = vld [vmem:[#allocation11 + $0x1e0] sm:$0xff]   ;;  %v2478_v36 = vshll.u32 %v2441_v6, 16 }
 0x240   : > { %3586 = vmatprep.subr.bf16.mxu0 %v3895_v13  ;;  %v2462_v39 = vrot.slane %v2460_v35, 5  ;;  %v2475_v35 = vshrl.u32 %v2441_v6, 16  ;;  %v2512_v40 = vshrl.u32 %v5087_v60, 16  ;;  %v2700_v1 = vld [vmem:[#allocation2 + $0x18] sm:$0xe] }
 0x241   : > { %v2457_v47 = vor.u32 %v2456_v63, %v2453_v41  ;;  %v5093_v41 = vld [vmem:[#allocation2 + $0x2c] sm:$0x1]  ;;  %v2718_v63 = vrot.slane %v5051_v15, 5  ;;  %v5102_v15 = vld [vmem:[#allocation2 + $0x38] sm:$0x1] }
 0x242   : > { %3571 = vmatpush3.bf16.msra.mxu1 %v3892_v52  ;;  %3555 = vmatmul.mubr.bf16.vlgmr.msra.gmra.mrb[32].mxu0 %v3212_v16  ;;  %v2108_v52 = vrot.slane %v5017_v62, 5  ;;  %v2467_v49 = vor.u32 %v2466_v48, %v2462_v39  ;;  %v2111_v62 = vrot.slane %v5031_v46, 5  ;;  %v3905_v16 = vld [vmem:[#allocation11 + $0x1d0] sm:$0xff]  }
 0x243   : > { %3572 = vmatprep.subr.bf16.mxu1 %v3894_v24  ;;  %3558 = vmatprep.mubr.bf16.mxu0 %v3213_v59  ;;  %v2458_v26 = vrot.slane %v2457_v47, 4  ;;  %v5096_v48 = vld [vmem:[#allocation2 + $0x40] sm:$0xf]  ;;  %v5100_v47 = vrot.slane %v2508_v19, 5 }
 0x244   : > { %3587 = vmatpush3.bf16.msra.mxu0 %v3895_v13  ;;  %v3228_v13 = vcombine.low %v2095_v50, %v2098_v54  ;;  %v2110_v23 = vrot.slane %v2108_v52, 4  ;;  %v2468_v51 = vrot.slane %v2467_v49, 4  ;;  %v2514_v49 = vrot.slane %v2512_v40, 4 }
 0x245   : > { %3588 = vmatprep.subr.bf16.mxu0 %v3897_v32  ;;  %v2463_v46 = vsel %vm4882_vm1, %v2458_v26, %v2462_v39  ;;  %v2447_v39 = vld [vmem:[#allocation2 + $0x3c] sm:$0xf]  ;;  %v2721_v26 = vrot.slane %v5064_v57, 5  ;;  %v3917_v57 = vld [vmem:[#allocation11 + $0x1f8] sm:$0xff]  }
 0x246   : > { %3573 = vmatpush3.bf16.msra.mxu1 %v3894_v24  ;;  %v3226_v24 = vrot.slane %v2072_v9, 9  ;;  %v2112_v59 = vsel %vm4899_vm2, %v2110_v23, %v2111_v62  ;;  %v2473_v17 = vsel %vm4882_vm1, %v2468_v51, %v2472_v42  ;;  %v2504_v9 = vrot.slane %v2502_v8, 5 }
 0x247   : > { %3574 = vmatprep.subr.bf16.mxu1 %v3896_v38  ;;  %v2523_v12 = vshrl.u32 %v2447_v39, 16  ;;  %v3263_v23 = vrot.slane %v2700_v1, 9  ;;  %v2720_v62 = vrot.slane %v2718_v63, 4 }
 0x248   : > { %3589 = vmatpush3.bf16.msra.mxu0 %v3897_v32  ;;  %v2109_v32 = vsel %vm4899_vm2, %v3226_v24, %v2108_v52  ;;  %v3912_v52 = vld [vmem:[#allocation2 + $0x24] sm:$0xff]  }
 0x249   : > { %3590 = vmatprep.subr.bf16.mxu0 %v3899_v22  ;;  %v3230_v11 = vcombine.low %v2109_v32, %v2112_v59  ;;  %v3915_v24 = vld [vmem:[#allocation11 + $0x1f0] sm:$0xff]   ;;  %v2515_v59 = vor.u32 %v2514_v49, %v5100_v47  ;;  %v2722_v6 = vsel %vm4899_vm2, %v2720_v62, %v2721_v26 }
 0x24a   : > { %3575 = vmatpush3.bf16.msra.mxu1 %v3896_v38  ;;  %3559 = vmatmul.mubr.bf16.gmra.mrb[36].mxu0 %v3214_v25  ;;  %v3908_v38 = vld [vmem:[#allocation11 + $0x1b0] sm:$0xff]   ;;  %v2488_v25 = vshrl.u32 %v5085_v20, 16 }
 0x24b   : > { %3576 = vmatprep.subr.bf16.mxu1 %v3898_v5  ;;  %3602 = vmatprep.mubr.bf16.mxu0 %v3900_v53  ;;  %v2477_v53 = vrot.slane %v2475_v35, 4 }
 0x24c   : > { %3591 = vmatpush3.bf16.msra.mxu0 %v3899_v22  ;;  %v3251_v22 = vcombine.low %v2463_v46, %v2473_v17  ;;  %v2490_v54 = vrot.slane %v2488_v25, 4  ;;  %v2518_v46 = vshll.u32 %v5102_v15, 16  ;;  %v2525_v17 = vrot.slane %v2523_v12, 4  ;;  %v3923_v12 = vld [vmem:[#allocation11 + $0x230] sm:$0xff]  }
 0x24d   : > { %3592 = vmatprep.subr.bf16.mxu0 %v3902_v55  ;;  %v2516_v25 = vrot.slane %v2515_v59, 4  ;;  %v2703_v59 = vld [vmem:[#allocation2 + $0x3c] sm:$0xe] }
 0x24e   : > { %3577 = vmatpush3.bf16.msra.mxu1 %v3898_v5  ;;  %v2484_v5 = vshll.u32 %v5085_v20, 16 }
 0x24f   : > { %3610 = vmatprep.subr.bf16.mxu1 %v3901_v43 }
 0x250   : > { %3593 = vmatpush3.bf16.msra.mxu0 %v3902_v55  ;;  %v3916_v55 = vld [vmem:[#allocation11 + $0x208] sm:$0xff]   ;;  %v5098_v50 = vrot.slane %v2484_v5, 5 }
 0x251   : > { %3579 = vmatmul.mubr.bf16.vlgmr.msra.gmra.mrb[24].mxu1 %v3228_v13  ;;  %3594 = vmatprep.subr.bf16.mxu0 %v3904_v2  ;;  %v2526_v13 = vshll.u32 %v2447_v39, 16 }
 0x252   : > { %3582 = vmatprep.mubr.bf16.mxu1 %v3229_v4  ;;  %3611 = vmatpush3.bf16.msra.mxu1 %v3901_v43  ;;  %v2480_v43 = vrot.slane %v2478_v36, 5  ;;  %v2536_v4 = vshrl.u32 %v5096_v48, 16  ;;  %v2491_v42 = vor.u32 %v2490_v54, %v5098_v50 }
 0x253   : > { %3612 = vmatprep.subr.bf16.mxu1 %v3903_v29 }
 0x254   : > { %3595 = vmatpush3.bf16.msra.mxu0 %v3904_v2  ;;  %v2501_v2 = vrot.slane %v2499_v37, 4  ;;  %v2481_v51 = vor.u32 %v2480_v43, %v2477_v53  ;;  %v2492_v35 = vrot.slane %v2491_v42, 4  ;;  %v3920_v37 = vld [vmem:[#allocation11 + $0x218] sm:$0xff]   ;;  %v3921_v43 = vld [vmem:[#allocation11 + $0x220] sm:$0xff]  }
 0x255   : > { %3596 = vmatprep.subr.bf16.mxu0 %v3906_v14 }
 0x256   : > { %3613 = vmatpush3.bf16.msra.mxu1 %v3903_v29  ;;  %v2532_v29 = vshll.u32 %v5096_v48, 16  ;;  %v2505_v32 = vor.u32 %v2504_v9, %v2501_v2  ;;  %v3922_v2 = vld [vmem:[#allocation11 + $0x228] sm:$0xff]  }
 0x257   : > { %3614 = vmatprep.subr.bf16.mxu1 %v3905_v16 }
 0x258   : > { %3597 = vmatpush3.bf16.msra.mxu0 %v3906_v14  ;;  %v2494_v14 = vshll.u32 %v5093_v41, 16  ;;  %v2506_v5 = vrot.slane %v2505_v32, 4 }
 0x259   : > { %3583 = vmatmul.mubr.bf16.gmra.mrb[28].mxu1 %v3230_v11  ;;  %3598 = vmatprep.subr.bf16.mxu0 %v3908_v38  ;;  %v2534_v11 = vrot.slane %v2532_v29, 5  ;;  %v2701_v29 = vld [vmem:[#allocation2 + $0x24] sm:$0xe] }
 0x25a   : > { %3615 = vmatpush3.bf16.msra.mxu1 %v3905_v16  ;;  %3626 = vmatprep.mubr.bf16.mxu1 %v3251_v22  ;;  %v3919_v16 = vld [vmem:[#allocation11 + $0x210] sm:$0xff]   ;;  %v2496_v36 = vrot.slane %v2494_v14, 5  ;;  %v2511_v39 = vsel %vm4882_vm1, %v2506_v5, %v5100_v47  ;;  %v3264_v62 = vrot.slane %v2701_v29, 9  ;;  %v2735_v14 = vrot.slane %v5102_v15, 5 }
 0x25b   : > { %3616 = vmatprep.subr.bf16.mxu1 %v3907_v7  ;;  %v3918_v22 = vld [vmem:[#allocation2 + $0x3c] sm:$0xff]  }
 0x25c   : > { %3599 = vmatpush3.bf16.msra.mxu0 %v3908_v38  ;;  %v2528_v38 = vrot.slane %v2526_v13, 5  ;;  %v2725_v13 = vrot.slane %v5085_v20, 5 }
 0x25d   : > { %3600 = vmatprep.subr.bf16.mxu0 %v3910_v30 }
 0x25e   : > { %3617 = vmatpush3.bf16.msra.mxu1 %v3907_v7  ;;  %v2538_v7 = vrot.slane %v2536_v4, 4  ;;  %v2529_v19 = vor.u32 %v2528_v38, %v2525_v17  ;;  %v2732_v4 = vrot.slane %v5087_v60, 5  ;;  %v2727_v26 = vrot.slane %v2725_v13, 4 }
 0x25f   : > { %3618 = vmatprep.subr.bf16.mxu1 %v3909_v31  ;;  %v2726_v20 = vsel %vm4899_vm2, %v3264_v62, %v2725_v13  ;;  %v3266_v17 = vrot.slane %v2703_v59, 9 }
 0x260   : > { %3601 = vmatpush3.bf16.msra.mxu0 %v3910_v30  ;;  %v2719_v30 = vsel %vm4899_vm2, %v3263_v23, %v2718_v63  ;;  %v2539_v40 = vor.u32 %v2538_v7, %v2534_v11  ;;  %v2497_v63 = vsel %vm4882_vm1, %v2492_v35, %v2496_v36  ;;  %v2530_v54 = vrot.slane %v2529_v19, 4  ;;  %v3924_v23 = vld [vmem:[#allocation11 + $0x238] sm:$0xff]  }
 0x261   : > { %3634 = vmatprep.subr.bf16.mxu0 %v3913_v27  ;;  %v3267_v8 = vcombine.low %v2719_v30, %v2722_v6  ;;  %v2734_v42 = vrot.slane %v2732_v4, 4 }
 0x262   : > { %3619 = vmatpush3.bf16.msra.mxu1 %v3909_v31  ;;  %v2482_v31 = vrot.slane %v2481_v51, 4  ;;  %v2540_v1 = vrot.slane %v2539_v40, 4  ;;  %v2535_v9 = vsel %vm4882_vm1, %v2530_v54, %v2534_v11  ;;  %v2728_v51 = vrot.slane %v5093_v41, 5 }
 0x263   : > { %3620 = vmatprep.subr.bf16.mxu1 %v3911_v33  ;;  %3603 = vmatmul.mubr.bf16.vlgmr.msra.gmra.mrb[40].mxu0 %v3912_v52  ;;  %v2736_v41 = vsel %vm4899_vm2, %v2734_v42, %v2735_v14  ;;  %v2742_v11 = vrot.slane %v5115_v21, 5 }
 0x264   : > { %3606 = vmatprep.mubr.bf16.mxu0 %v3914_v3  ;;  %3635 = vmatpush3.bf16.msra.mxu0 %v3913_v27  ;;  %v2520_v27 = vrot.slane %v2518_v46, 5  ;;  %v2729_v60 = vsel %vm4899_vm2, %v2727_v26, %v2728_v51 }
 0x265   : > { %3636 = vmatprep.subr.bf16.mxu0 %v3916_v55  ;;  %v3268_v46 = vcombine.low %v2726_v20, %v2729_v60 }
 0x266   : > { %3621 = vmatpush3.bf16.msra.mxu1 %v3911_v33  ;;  %v2542_v33 = vshll.u32 %v5115_v21, 16  ;;  %v2521_v53 = vsel %vm4882_vm1, %v2516_v25, %v2520_v27 }
 0x267   : > { %3622 = vmatprep.subr.bf16.mxu1 %v3915_v24 }
 0x268   : > { %3637 = vmatpush3.bf16.msra.mxu0 %v3916_v55  ;;  %v2487_v55 = vsel %vm4882_vm1, %v2482_v31, %v5098_v50  ;;  %v2544_v52 = vrot.slane %v2542_v33, 5  ;;  %v3253_v50 = vcombine.low %v2511_v39, %v2521_v53 }
 0x269   : > { %3638 = vmatprep.subr.bf16.mxu0 %v3919_v16  ;;  %v3252_v3 = vcombine.low %v2487_v55, %v2497_v63 }
 0x26a   : > { %3623 = vmatpush3.bf16.msra.mxu1 %v3915_v24  ;;  %v2545_v47 = vsel %vm4882_vm1, %v2540_v1, %v2544_v52  ;;  %v2702_v24 = vld [vmem:[#allocation2 + $0x30] sm:$0xe] }
 0x26b   : > { %3624 = vmatprep.subr.bf16.mxu1 %v3917_v57  ;;  %3607 = vmatmul.mubr.bf16.gmra.mrb[44].mxu0 %v3918_v22  ;;  %v3254_v49 = vcombine.low %v2535_v9, %v2545_v47  ;;  %v3265_v45 = vrot.slane %v2702_v24, 9 }
 0x26c   : > { %3639 = vmatpush3.bf16.msra.mxu0 %v3919_v16  ;;  %3650 = vmatprep.mubr.bf16.mxu0 %v3267_v8  ;;  %v2739_v16 = vrot.slane %v5096_v48, 5 }
 0x26d   : > { %3640 = vmatprep.subr.bf16.mxu0 %v3920_v37  ;;  %v2733_v32 = vsel %vm4899_vm2, %v3265_v45, %v2732_v4 }
 0x26e   : > { %3625 = vmatpush3.bf16.msra.mxu1 %v3917_v57  ;;  %v3269_v15 = vcombine.low %v2733_v32, %v2736_v41  ;;  %v2741_v38 = vrot.slane %v2739_v16, 4  ;;  %v2740_v7 = vsel %vm4899_vm2, %v3266_v17, %v2739_v16 }
 0x270   : > { %3641 = vmatpush3.bf16.msra.mxu0 %v3920_v37  ;;  %v2743_v48 = vsel %vm4899_vm2, %v2741_v38, %v2742_v11 }
 0x271   : > { %3627 = vmatmul.mubr.bf16.vlgmr.msra.gmra.mrb[32].mxu1 %v3252_v3  ;;  %3642 = vmatprep.subr.bf16.mxu0 %v3921_v43  ;;  %v3270_v57 = vcombine.low %v2740_v7, %v2743_v48 }
 0x272   : > { %3630 = vmatprep.mubr.bf16.mxu1 %v3253_v50 }
 0x274   : > { %3643 = vmatpush3.bf16.msra.mxu0 %v3921_v43 }
 0x275   : > { %3644 = vmatprep.subr.bf16.mxu0 %v3922_v2 }
 0x278   : > { %3645 = vmatpush3.bf16.msra.mxu0 %v3922_v2 }
 0x279   : > { %3631 = vmatmul.mubr.bf16.gmra.mrb[36].mxu1 %v3254_v49  ;;  %3646 = vmatprep.subr.bf16.mxu0 %v3923_v12 }
 0x27c   : > { %3647 = vmatpush3.bf16.msra.mxu0 %v3923_v12 }
 0x27d   : > { %3648 = vmatprep.subr.bf16.mxu0 %v3924_v23 }
 0x280   : > { %3649 = vmatpush3.bf16.msra.mxu0 %v3924_v23 }
 0x283   : > { %3651 = vmatmul.mubr.bf16.vlgmr.msra.gmra.mrb[48].mxu0 %v3268_v46 }
 0x284   : > { %3654 = vmatprep.mubr.bf16.mxu0 %v3269_v15 }
 0x28b   : > { %3655 = vmatmul.mubr.bf16.gmra.mrb[52].mxu0 %v3270_v57 }
 0x2d3   : > { %v3460_v22 = vpop.f32.mrb[16].mxu0 }
 0x2d4   : > { %v1165_v30 = vadd.f32 %v3460_v22, %v4816_v0  ;;  %v1132_v6 = vpop.f32.mrb[17].mxu0 }
 0x2d5   : > { %v1163_v31 = vadd.f32 %v1132_v6, %v4798_v18  ;;  %v3461_v35 = vpop.f32.mrb[18].mxu0 }
 0x2d6   : > { %v1166_v36 = vadd.f32 %v3461_v35, %v4830_v10  ;;  %v1135_v21 = vpop.f32.mrb[19].mxu0 }
 0x2d7   : > { %v1164_v5 = vadd.f32 %v1135_v21, %v4805_v28 }
 0x2e2   : > { %v3464_v25 = vpop.f32.mrb[20].mxu0 }
 0x2e3   : > { %v1169_v37 = vadd.f32 %v3464_v25, %v4928_v58  ;;  %v1148_v56 = vpop.f32.mrb[21].mxu0 }
 0x2e4   : > { %v3484_v27 = vpop.f32.mrb[8].mxu1  ;;  %v1167_v40 = vadd.f32 %v1148_v56, %v4848_v34  ;;  %v3465_v33 = vpop.f32.mrb[22].mxu0 }
 0x2e5   : > { %v1430_v8 = vadd.f32 %v3484_v27, %v1165_v30  ;;  %v1397_v19 = vpop.f32.mrb[9].mxu1  ;;  %v1170_v18 = vadd.f32 %v3465_v33, %v4980_v61  ;;  %v1151_v63 = vpop.f32.mrb[23].mxu0 }
 0x2e6   : > { %v1428_v0 = vadd.f32 %v1397_v19, %v1163_v31  ;;  %v3485_v55 = vpop.f32.mrb[10].mxu1  ;;  %v1168_v53 = vadd.f32 %v1151_v63, %v4852_v44 }
 0x2e7   : > { %v1431_v39 = vadd.f32 %v3485_v55, %v1166_v36  ;;  %v1400_v10 = vpop.f32.mrb[11].mxu1 }
 0x2e8   : > { %v1429_v28 = vadd.f32 %v1400_v10, %v1164_v5 }
 0x2ef   : > { %v3488_v43 = vpop.f32.mrb[12].mxu1 }
 0x2f0   : > { %v1434_v54 = vadd.f32 %v3488_v43, %v1169_v37  ;;  %v1413_v1 = vpop.f32.mrb[13].mxu1 }
 0x2f1   : > { %v1432_v58 = vadd.f32 %v1413_v1, %v1167_v40  ;;  %v3489_v52 = vpop.f32.mrb[14].mxu1 }
 0x2f2   : > { %v1435_v3 = vadd.f32 %v3489_v52, %v1170_v18  ;;  %v1416_v50 = vpop.f32.mrb[15].mxu1 }
 0x2f3   : > { %v1433_v2 = vadd.f32 %v1416_v50, %v1168_v53 }
 0x2f4   : > { %v3508_v34 = vpop.f32.mrb[24].mxu0 }
 0x2f5   : > { %v1631_v9 = vadd.f32 %v3508_v34, %v1430_v8  ;;  %v1598_v47 = vpop.f32.mrb[25].mxu0 }
 0x2f6   : > { %v1629_v49 = vadd.f32 %v1598_v47, %v1428_v0  ;;  %v3509_v12 = vpop.f32.mrb[26].mxu0 }
 0x2f7   : > { %v1632_v61 = vadd.f32 %v3509_v12, %v1431_v39  ;;  %v1601_v13 = vpop.f32.mrb[27].mxu0 }
 0x2f8   : > { %v1630_v29 = vadd.f32 %v1601_v13, %v1429_v28 }
 0x2fc   : > { %v3512_v4 = vpop.f32.mrb[28].mxu0 }
 0x2fd   : > { %v1635_v24 = vadd.f32 %v3512_v4, %v1434_v54  ;;  %v1614_v44 = vpop.f32.mrb[29].mxu0 }
 0x2fe   : > { %v1633_v23 = vadd.f32 %v1614_v44, %v1432_v58  ;;  %v3513_v62 = vpop.f32.mrb[30].mxu0 }
 0x2ff   : > { %v1636_v26 = vadd.f32 %v3513_v62, %v1435_v3  ;;  %v1617_v51 = vpop.f32.mrb[31].mxu0 }
 0x300   : > { %v1634_v45 = vadd.f32 %v1617_v51, %v1433_v2 }
 0x304   : > { %v3532_v42 = vpop.f32.mrb[16].mxu1 }
 0x305   : > { %v1801_v14 = vadd.f32 %v3532_v42, %v1631_v9  ;;  %v1768_v20 = vpop.f32.mrb[17].mxu1 }
 0x306   : > { %v1799_v60 = vadd.f32 %v1768_v20, %v1629_v49  ;;  %v3533_v16 = vpop.f32.mrb[18].mxu1 }
 0x307   : > { %v1802_v32 = vadd.f32 %v3533_v16, %v1632_v61  ;;  %v1771_v41 = vpop.f32.mrb[19].mxu1 }
 0x308   : > { %v1800_v59 = vadd.f32 %v1771_v41, %v1630_v29 }
 0x30c   : > { %v3536_v46 = vpop.f32.mrb[20].mxu1 }
 0x30d   : > { %v1805_v15 = vadd.f32 %v3536_v46, %v1635_v24  ;;  %v1784_v17 = vpop.f32.mrb[21].mxu1 }
 0x30e   : > { %v1803_v38 = vadd.f32 %v1784_v17, %v1633_v23  ;;  %v3537_v11 = vpop.f32.mrb[22].mxu1 }
 0x30f   : > { %v1806_v7 = vadd.f32 %v3537_v11, %v1636_v26  ;;  %v1787_v48 = vpop.f32.mrb[23].mxu1 }
 0x310   : > { %v1804_v57 = vadd.f32 %v1787_v48, %v1634_v45 }
 0x315   : > { %v3556_v22 = vpop.f32.mrb[32].mxu0 }
 0x316   : > { %v2063_v30 = vadd.f32 %v3556_v22, %v1801_v14  ;;  %v2030_v6 = vpop.f32.mrb[33].mxu0 }
 0x317   : > { %v2061_v31 = vadd.f32 %v2030_v6, %v1799_v60  ;;  %v3557_v35 = vpop.f32.mrb[34].mxu0 }
 0x318   : > { %v2064_v36 = vadd.f32 %v3557_v35, %v1802_v32  ;;  %v2033_v21 = vpop.f32.mrb[35].mxu0 }
 0x319   : > { %v2062_v5 = vadd.f32 %v2033_v21, %v1800_v59 }
 0x31d   : > { %v3560_v25 = vpop.f32.mrb[36].mxu0 }
 0x31e   : > { %v2067_v27 = vadd.f32 %v3560_v25, %v1805_v15  ;;  %v2046_v37 = vpop.f32.mrb[37].mxu0 }
 0x31f   : > { %v2065_v56 = vadd.f32 %v2046_v37, %v1803_v38  ;;  %v3561_v8 = vpop.f32.mrb[38].mxu0 }
 0x320   : > { %v2068_v19 = vadd.f32 %v3561_v8, %v1806_v7  ;;  %v2049_v40 = vpop.f32.mrb[39].mxu0 }
 0x321   : > { %v2066_v33 = vadd.f32 %v2049_v40, %v1804_v57 }
 0x324   : > { %v3580_v0 = vpop.f32.mrb[24].mxu1 }
 0x325   : > { %v2261_v55 = vadd.f32 %v3580_v0, %v2063_v30  ;;  %v2228_v18 = vpop.f32.mrb[25].mxu1 }
 0x326   : > { %v2259_v63 = vadd.f32 %v2228_v18, %v2061_v31  ;;  %v3581_v39 = vpop.f32.mrb[26].mxu1 }
 0x327   : > { %v2262_v10 = vadd.f32 %v3581_v39, %v2064_v36  ;;  %v2231_v53 = vpop.f32.mrb[27].mxu1 }
 0x328   : > { %v2260_v28 = vadd.f32 %v2231_v53, %v2062_v5 }
 0x32c   : > { %v3584_v43 = vpop.f32.mrb[28].mxu1 }
 0x32d   : > { %v2265_v54 = vadd.f32 %v3584_v43, %v2067_v27  ;;  %v2244_v1 = vpop.f32.mrb[29].mxu1 }
 0x32e   : > { %v2263_v58 = vadd.f32 %v2244_v1, %v2065_v56  ;;  %v3585_v52 = vpop.f32.mrb[30].mxu1 }
 0x32f   : > { %v2266_v3 = vadd.f32 %v3585_v52, %v2068_v19  ;;  %v2247_v50 = vpop.f32.mrb[31].mxu1 }
 0x330   : > { %v2264_v2 = vadd.f32 %v2247_v50, %v2066_v33 }
 0x336   : > { %v3604_v34 = vpop.f32.mrb[40].mxu0 }
 0x337   : > { %v2432_v9 = vadd.f32 %v3604_v34, %v2261_v55  ;;  %v2399_v47 = vpop.f32.mrb[41].mxu0 }
 0x338   : > { %v2430_v49 = vadd.f32 %v2399_v47, %v2259_v63  ;;  %v3605_v12 = vpop.f32.mrb[42].mxu0 }
 0x339   : > { %v2433_v61 = vadd.f32 %v3605_v12, %v2262_v10  ;;  %v2402_v13 = vpop.f32.mrb[43].mxu0 }
 0x33a   : > { %v2431_v29 = vadd.f32 %v2402_v13, %v2260_v28 }
 0x33e   : > { %v3608_v4 = vpop.f32.mrb[44].mxu0 }
 0x33f   : > { %v2436_v24 = vadd.f32 %v3608_v4, %v2265_v54  ;;  %v2415_v44 = vpop.f32.mrb[45].mxu0 }
 0x340   : > { %v2434_v23 = vadd.f32 %v2415_v44, %v2263_v58  ;;  %v3609_v62 = vpop.f32.mrb[46].mxu0 }
 0x341   : > { %v2437_v26 = vadd.f32 %v3609_v62, %v2266_v3  ;;  %v2418_v51 = vpop.f32.mrb[47].mxu0 }
 0x342   : > { %v2435_v45 = vadd.f32 %v2418_v51, %v2264_v2 }
 0x344   : > { %v3628_v42 = vpop.f32.mrb[32].mxu1 }
 0x345   : > { %v2694_v14 = vadd.f32 %v3628_v42, %v2432_v9  ;;  %v2661_v20 = vpop.f32.mrb[33].mxu1 }
 0x346   : > { %v2692_v60 = vadd.f32 %v2661_v20, %v2430_v49  ;;  %v3629_v16 = vpop.f32.mrb[34].mxu1 }
 0x347   : > { %v2695_v32 = vadd.f32 %v3629_v16, %v2433_v61  ;;  %v2664_v41 = vpop.f32.mrb[35].mxu1 }
 0x348   : > { %v2693_v59 = vadd.f32 %v2664_v41, %v2431_v29 }
 0x34c   : > { %v3632_v46 = vpop.f32.mrb[36].mxu1 }
 0x34d   : > { %v2698_v15 = vadd.f32 %v3632_v46, %v2436_v24  ;;  %v2677_v17 = vpop.f32.mrb[37].mxu1 }
 0x34e   : > { %v2696_v38 = vadd.f32 %v2677_v17, %v2434_v23  ;;  %v3633_v11 = vpop.f32.mrb[38].mxu1 }
 0x34f   : > { %v2699_v7 = vadd.f32 %v3633_v11, %v2437_v26  ;;  %v2680_v48 = vpop.f32.mrb[39].mxu1 }
 0x350   : > { %v2697_v57 = vadd.f32 %v2680_v48, %v2435_v45 }
 0x356   : > { %v3652_v22 = vpop.f32.mrb[48].mxu0 }
 0x357   : > { %v2892_v30 = vadd.f32 %v3652_v22, %v2694_v14  ;;  %v2859_v6 = vpop.f32.mrb[49].mxu0 }
 0x358   : > { %v2890_v31 = vadd.f32 %v2859_v6, %v2692_v60  ;;  %v3653_v35 = vpop.f32.mrb[50].mxu0 }
 0x359   : > { %v2900_v36 = vmax.f32 %v2892_v30, 0.0  ;;  %v2893_v21 = vadd.f32 %v3653_v35, %v2695_v32  ;;  %v2862_v5 = vpop.f32.mrb[51].mxu0 }
 0x35a   : > { %v2898_v25 = vmax.f32 %v2890_v31, 0.0  ;;  %v2891_v27 = vadd.f32 %v2862_v5, %v2693_v59 }
 0x35b   : > { %2908 = vst [vmem:[%s426_s9 + $0x10] sm:$0xff] %v2900_v36  ;;  %v2901_v37 = vmax.f32 %v2893_v21, 0.0 }
 0x35c   : > { %2906 = vst [vmem:[%s426_s9] sm:$0xff] %v2898_v25  ;;  %v2899_v56 = vmax.f32 %v2891_v27, 0.0 }
 0x35d   : > { %2909 = vst [vmem:[%s426_s9 + $0x18] sm:$0xff] %v2901_v37 }
 0x35e   : > { %2907 = vst [vmem:[%s426_s9 + $0x8] sm:$0xff] %v2899_v56  ;;  %v3656_v8 = vpop.f32.mrb[52].mxu0 }
 0x35f   : > { %v2896_v19 = vadd.f32 %v3656_v8, %v2698_v15  ;;  %v2875_v40 = vpop.f32.mrb[53].mxu0 }
 0x360   : > { %v2894_v33 = vadd.f32 %v2875_v40, %v2696_v38  ;;  %v3657_v0 = vpop.f32.mrb[54].mxu0 }
 0x361   : > { %v2904_v55 = vmax.f32 %v2896_v19, 0.0  ;;  %v2897_v18 = vadd.f32 %v3657_v0, %v2699_v7  ;;  %v2878_v63 = vpop.f32.mrb[55].mxu0 }
 0x362   : > { %v2902_v39 = vmax.f32 %v2894_v33, 0.0  ;;  %v2895_v10 = vadd.f32 %v2878_v63, %v2697_v57 }
 0x363   : > { %2912 = vst [vmem:[%s426_s9 + $0x30] sm:$0xff] %v2904_v55  ;;  %v2905_v53 = vmax.f32 %v2897_v18, 0.0 }
 0x364   : > { %2910 = vst [vmem:[%s426_s9 + $0x20] sm:$0xff] %v2902_v39  ;;  %v2903_v28 = vmax.f32 %v2895_v10, 0.0 }
 0x365   : > { %2913 = vst [vmem:[%s426_s9 + $0x38] sm:$0xff] %v2905_v53 }
 0x366   : > { %2911 = vst [vmem:[%s426_s9 + $0x28] sm:$0xff] %v2903_v28 }
 0x367   : > { %4084 = shalt.err (!%p4081_p9)
}
 0x368   : > { %s4085_s24 = scalar_lea.hbm %s5166_s11, 1024  ;;  %s4089_s9 = scalar_lea.hbm %s5364_s12, 8192 }
 0x369   : > { %p4086_p11 = scmp.ne.s32.totalorder %s5166_s11, %s4085_s24  ;;  %p4090_p4 = scmp.lt.u32.totalorder %s5166_s11, %s5364_s12 }
 0x36a   : > { %p4091_p10 = scmp.lt.u32.totalorder %s4089_s9, %s4085_s24  ;;  %p4093_p8 = scmp.lt.u32.totalorder %s4085_s24, %s5166_s11 }
 0x36b   : > { %p4087_p3 = pnand %p4086_p11, %p5365_p0 }
 0x36c   : > { %p4092_p12 = por %p4091_p10, %p4090_p4 }
 0x36d   : > { %p4088_p7 = pneg %p4087_p3 }
 0x36e   : > { %p4094_p13 = por %p4093_p8, %p4092_p12 }
 0x370   : > { %p4095_p1 = pnand %p4094_p13, %p4088_p7 }
 0x372   : > { %4098 = shalt.err (!%p4095_p1)
}
 0x373   : > { %s4244_s13 = smov 128   ;;  %s4245_s15 = smov 8  }
 0x374   : > { %3672 = dma.vmem_to_hbm [thread:$0]  (%p5365_p0), %s5161_s3, 1024, %s5166_s11, %s2915_s17, %s4244_s13, %s4244_s13, %s4245_s15  }
 0x375 PF: > { %p3700_p2 = scmp.ge.s32.totalorder %s4229_s10, 2  ;;  %s2946_s0 = sand.u32 1, %s4201_s27  }
 0x376   : > { %p5366_p5 = scmp.ne.s32.totalorder %s5317_s6, 0  ;;  %s2947_s4 = scalar_lea.sflag [#allocation5], %s2946_s0 }
 0x378   : > { %p3692_p6 = pnand %p3700_p2, %p5366_p5 }
 0x37a   : > { %4172 = dma.done.wait (!%p3692_p6), %s2947_s4, 1024  }
 0x37b   : > { %4174 = vsyncadd (!%p3692_p6), %s2947_s4, 4294966272  ;;  %s26_s10 = sadd.s32 1, %s4229_s10   ;;  %s5368_s21 = sld [smem:[#allocation19_spill]] }
 0x37c   : > { %p5197_p9 = scmp.ge.s32.totalorder %s26_s10, 10   ;;  %s5369_s22 = sld [smem:[#allocation20_spill]] }
 0x37d   : > { %s5370_s24 = sld [smem:[#allocation21_spill]]  ;;  %s5371_s16 = sld [smem:[#allocation31_spill]] }
 0x37e   : > { %s5372_s6 = sld [smem:[#allocation24_spill]]  ;;  %s5373_s7 = sld [smem:[#allocation25_spill]] }
 0x37f   : > { %s5374_s8 = sld [smem:[#allocation27_spill]]  ;;  %s5375_s9 = sld [smem:[#allocation28_spill]] }
 0x380   : > { %s5377_s23 = smov %s5399_s30  ;;  %s5378_s25 = smov %s4197_s26 }
 0x381   : > { %s5379_s26 = smov %s4437_s2  ;;  %s5380_s27 = smov %s4205_s28 }
 0x382   : > { %s5381_s28 = smov %s4209_s29  ;;  %25 = sbr.rel (!%p5197_p9) target bundleno = 21 (0x15), region = 132 }
 0x383   : > { %s5382_s29 = smov %s5371_s16 }
 0x384   : > { %s5383_s30 = smov %s5372_s6 }
 0x389   :  { %2952 = vsyncpa [#allocation4], 1 }
 0x38a   :  { %2954 = vsyncpa [#allocation4 + $0x1], 1 }
 0x38b   :  { %2955 = vsyncpa [#allocation7], 1 }
 0x38c   :  { %2957 = vsyncpa [#allocation7 + $0x1], 1 }
 0x38d   :  { %2958 = vsyncpa [#allocation10], 1 }
 0x38e   :  { %2959 = vsyncpa [#allocation5], 1 }
 0x38f   :  { %2961 = vsyncpa [#allocation5 + $0x1], 1 }

</bundles_post_ra>
